<compile_context>
chip_gen: v5e
topology: v5e:2x2
jax: 0.10.0
libtpu: 0.0.40
codegen_flags: <defaults>
</compile_context>

<pallas_src>
import functools
import math

import jax
import jax.numpy as jnp
from jax.experimental import pallas as pl
from jax.experimental.pallas import tpu as pltpu

_SQRT_2_OVER_PI = math.sqrt(2.0 / math.pi)
_INV_SQRT2 = 1.0 / math.sqrt(2.0)


# ---------------------------------------------------------------------------
# One-time capability / hardware probes (resolved at import, not per call).
# ---------------------------------------------------------------------------
def _probe_buffered():
    """Can grid-invariant inputs be single-buffered via pipeline_mode=pl.Buffered(1)?"""
    try:
        spec = pl.BlockSpec((8, 128), lambda i: (0, 0), pipeline_mode=pl.Buffered(1))
    except (AttributeError, TypeError):
        return False
    try:
        def _copy(x_ref, o_ref):
            o_ref[...] = x_ref[...]
        out = pl.pallas_call(
            _copy,
            out_shape=jax.ShapeDtypeStruct((8, 128), jnp.float32),
            grid_spec=pltpu.PrefetchScalarGridSpec(
                num_scalar_prefetch=0, grid=(1,),
                in_specs=[spec],
                out_specs=pl.BlockSpec((8, 128), lambda i: (0, 0))),
        )(jnp.zeros((8, 128), jnp.float32))
        jax.block_until_ready(out)
        return True
    except Exception:
        # Only this Buffered(1) probe kernel is guarded; the real call is not.
        return False


def _vmem_capacity_bytes():
    try:
        cap = getattr(pltpu.get_tpu_info(), "vmem_capacity_bytes", None)
        if cap:
            return int(cap)
    except Exception:
        pass
    return 64 * 1024 * 1024  # conservative default = v7x per-TC VMEM


def _device_kind():
    try:
        return jax.local_devices()[0].device_kind.lower()
    except Exception:
        return ""


_HAS_BUFFERED = _probe_buffered()
_VMEM_CAP = _vmem_capacity_bytes()
_DEV_KIND = _device_kind()
_MULTI_TC = "v7" in _DEV_KIND                      # v7x: 2 TensorCores/chip
_SMALL_MXU = any(k in _DEV_KIND for k in ("v2", "v3", "v4", "v5 lite", "v5e", "v5lite"))


# ---------------------------------------------------------------------------
# Kernel
# ---------------------------------------------------------------------------
def _gelu(x, *, approximate_tanh):
    if approximate_tanh:
        # tanh form -> EUP slot; overlaps with MXU/VALU work.
        return 0.5 * x * (1.0 + jnp.tanh(_SQRT_2_OVER_PI * (x + 0.044715 * x * x * x)))
    # Exact erf-based GELU (matches torch.nn.GELU() default).
    return 0.5 * x * (1.0 + jax.lax.erf(x * _INV_SQRT2))


def _mlp_kernel(x_ref, w1_ref, b1_ref, w2_ref, b2_ref, w3_ref, b3_ref, o_ref,
                *, tanh_gelu, compute_dtype):
    # x / weights arrive already in `compute_dtype` (cast wrapper-side, once);
    # biases stay f32; every matmul accumulates in f32 on the MXU.
    h = jnp.dot(x_ref[...], w1_ref[...], preferred_element_type=jnp.float32) + b1_ref[...]
    h = _gelu(h, approximate_tanh=tanh_gelu)
    h = jnp.dot(h.astype(compute_dtype), w2_ref[...],
                preferred_element_type=jnp.float32) + b2_ref[...]
    h = _gelu(h, approximate_tanh=tanh_gelu)
    h = jnp.dot(h.astype(compute_dtype), w3_ref[...],
                preferred_element_type=jnp.float32) + b3_ref[...]
    o_ref[...] = h.astype(o_ref.dtype)


# ---------------------------------------------------------------------------
# Wrapper
# ---------------------------------------------------------------------------
def _round_up(x, m):
    return (x + m - 1) // m * m


def _choose_pack(in_ch, out_ch, lane_target, max_pack=8):
    """Smallest power-of-two token-pack factor making the output (and ideally also
    the input) last dim a multiple of `lane_target`."""
    best = None
    p = 1
    while p <= max_pack:
        if (out_ch * p) % lane_target == 0:
            if best is None:
                best = p
            if (in_ch * p) % lane_target == 0:
                return p
        p *= 2
    if best is not None:
        return best
    if lane_target > 128:
        return _choose_pack(in_ch, out_ch, 128, max_pack)
    return 1


def make_linear_projection(params, *, row_tile=1024, tanh_gelu=True,
                           bf16_matmul=True, out_dtype=jnp.float32):
    """Pack the weights once and return a jitted apply(x) for the fused MLP.

    params = ((w1, b1), (w2, b2), (w3, b3)); weights stored (in_features, out_features)
    (transposed vs torch.nn.Linear).  Defaults (bf16 MXU + tanh GELU) are the fast
    path; pass tanh_gelu=False, bf16_matmul=False for exact f32/erf torch numerics.
    """
    (w1, b1), (w2, b2), (w3, b3) = params
    in_ch, out_ch = w1.shape
    compute_dtype = jnp.bfloat16 if bf16_matmul else jnp.float32
    x_bytes = jnp.dtype(compute_dtype).itemsize

    # MXU-depth / lane alignment target: 256 (fill 256-deep MXU K) on v6e/v7x bf16,
    # 128 otherwise.
    lane_target = 128 if (_SMALL_MXU or not bf16_matmul) else 256
    pack = _choose_pack(in_ch, out_ch, lane_target)
    in_w, out_w = in_ch * pack, out_ch * pack

    # --- pack weights ONCE (block-diagonal: mathematically identical per token),
    #     cast to compute dtype wrapper-side.
    def prep_w(w):
        w = w.astype(jnp.float32)
        if pack > 1:
            w = jnp.kron(jnp.eye(pack, dtype=jnp.float32), w)
        return w.astype(compute_dtype)

    def prep_b(b):
        b = b.astype(jnp.float32)
        if pack > 1:
            b = jnp.tile(b, pack)
        return b.reshape(1, -1)      # stays f32 (added to the f32 accumulator)

    packed = (prep_w(w1), prep_b(b1), prep_w(w2), prep_b(b2), prep_w(w3), prep_b(b3))

    weight_bytes = (in_w * out_w + 2 * out_w * out_w) * x_bytes + 3 * out_w * 4
    vmem_cap = int(0.80 * _VMEM_CAP)   # headroom for Mosaic internal scratch

    def vmem_estimate(rt):
        tiles = 2 * rt * (in_w * x_bytes + out_w * 4)   # double-buffered x / out tiles
        inter = 2 * rt * out_w * 4                      # live f32 intermediates
        wmul = 1 if _HAS_BUFFERED else 2
        return tiles + wmul * weight_bytes + inter

    def pick_row_tile(packed_rows):
        rt = min(row_tile, _round_up(packed_rows, 8))
        if _MULTI_TC and 16 <= packed_rows <= rt:
            # v7x only (2 TCs): give both cores a grid step; pure overhead on v5e/v6e.
            rt = _round_up(pl.cdiv(packed_rows, 2), 8)
        while rt > 8 and vmem_estimate(rt) > vmem_cap:
            rt = _round_up(rt // 2, 8)
        return max(rt, 8)
    # TODO(synk): for very large out_ch (resident weights alone near vmem_cap) add a
    # second "arbitrary" grid axis tiling W2/W3 over N instead of shrinking the row tile.

    kernel = functools.partial(_mlp_kernel, tanh_gelu=tanh_gelu,
                               compute_dtype=compute_dtype)

    if _HAS_BUFFERED:
        def const_spec(shape):   # grid-invariant: single-buffered, stays resident
            return pl.BlockSpec(shape, lambda i: (0, 0), pipeline_mode=pl.Buffered(1))
    else:
        def const_spec(shape):
            return pl.BlockSpec(shape, lambda i: (0, 0))

    def apply(x, packed_params):
        w1p, b1p, w2p, b2p, w3p, b3p = packed_params
        orig_shape = x.shape
        assert orig_shape[-1] == in_ch
        n_tok = 1
        for d in orig_shape[:-1]:
            n_tok *= d
        xf = x.reshape(n_tok, in_ch).astype(compute_dtype)

        packed_rows = pl.cdiv(n_tok, pack)
        rt = pick_row_tile(packed_rows)
        rows_pad = _round_up(packed_rows, rt)
        n_tok_pad = rows_pad * pack
        if n_tok_pad != n_tok:
            # TODO(synk): mask only the final ragged tile in-kernel instead of a full
            # pad copy when activations dominate HBM traffic.
            xf = jnp.pad(xf, ((0, n_tok_pad - n_tok), (0, 0)))
        xp = xf.reshape(rows_pad, in_w)
        grid = (rows_pad // rt,)

        vmem_limit = int(min(vmem_cap, max(32 * 1024 * 1024, 2 * vmem_estimate(rt))))
        cost = pl.CostEstimate(
            flops=2 * rows_pad * (in_w * out_w + 2 * out_w * out_w),
            transcendentals=2 * rows_pad * out_w,
            bytes_accessed=(rows_pad * in_w * x_bytes + rows_pad * out_w * 4
                            + weight_bytes),
        )

        out = pl.pallas_call(
            kernel,
            out_shape=jax.ShapeDtypeStruct((rows_pad, out_w), out_dtype),
            grid_spec=pltpu.PrefetchScalarGridSpec(
                num_scalar_prefetch=0,
                grid=grid,
                in_specs=[
                    pl.BlockSpec((rt, in_w), lambda i: (i, 0)),   # x tile
                    const_spec((in_w, out_w)),                    # W1
                    const_spec((1, out_w)),                       # b1
                    const_spec((out_w, out_w)),                   # W2
                    const_spec((1, out_w)),                       # b2
                    const_spec((out_w, out_w)),                   # W3
                    const_spec((1, out_w)),                       # b3
                ],
                out_specs=pl.BlockSpec((rt, out_w), lambda i: (i, 0)),
            ),
            compiler_params=pltpu.CompilerParams(
                dimension_semantics=("parallel",),
                vmem_limit_bytes=vmem_limit,
            ),
            cost_estimate=cost,
        )(xp, w1p, b1p, w2p, b2p, w3p, b3p)

        out = out.reshape(rows_pad * pack, out_ch)[:n_tok]
        return out.reshape(orig_shape[:-1] + (out_ch,))

    apply_jit = jax.jit(apply)
    return lambda x: apply_jit(x, packed)


def init_params(key, in_channels, out_channels):
    """Deterministic init mimicking nn.Linear's uniform(-1/sqrt(fan_in), ...).
    Weights stored as (in_features, out_features) (transposed vs PyTorch)."""
    keys = jax.random.split(key, 6)

    def linear(kw, kb, fan_in, fan_out):
        bound = 1.0 / math.sqrt(fan_in)
        w = jax.random.uniform(kw, (fan_in, fan_out), jnp.float32, -bound, bound)
        b = jax.random.uniform(kb, (fan_out,), jnp.float32, -bound, bound)
        return w, b

    p1 = linear(keys[0], keys[1], in_channels, out_channels)
    p2 = linear(keys[2], keys[3], out_channels, out_channels)
    p3 = linear(keys[4], keys[5], out_channels, out_channels)
    return (p1, p2, p3)


if __name__ == "__main__":
    in_channels = 32
    out_channels = 64
    batch, seq = 2, 8

    key = jax.random.PRNGKey(0)
    k_x, k_p = jax.random.split(key)

    x = jax.random.normal(k_x, (batch, seq, in_channels), dtype=jnp.float32)
    params = init_params(k_p, in_channels, out_channels)

    # Fast path (defaults): bf16 MXU + f32 accumulation, tanh GELU.
    proj = make_linear_projection(params)
    y = proj(x)
    jax.block_until_ready(y)
    assert y.shape == (batch, seq, out_channels)
    assert y.dtype == jnp.float32

    (w1, b1), (w2, b2), (w3, b3) = params

    def ref_matched(x):  # matches the fast path's numerics (bf16 ops, f32 accum, tanh)
        cd = jnp.bfloat16
        h = x.reshape(-1, in_channels).astype(cd)
        h = jnp.dot(h, w1.astype(cd), preferred_element_type=jnp.float32) + b1
        h = jax.nn.gelu(h, approximate=True)
        h = jnp.dot(h.astype(cd), w2.astype(cd), preferred_element_type=jnp.float32) + b2
        h = jax.nn.gelu(h, approximate=True)
        h = jnp.dot(h.astype(cd), w3.astype(cd), preferred_element_type=jnp.float32) + b3
        return h.reshape(batch, seq, out_channels)

    def ref_exact(x):    # exact torch semantics: f32 everywhere, erf GELU
        h = x.reshape(-1, in_channels).astype(jnp.float32)
        h = jax.nn.gelu(h @ w1 + b1, approximate=False)
        h = jax.nn.gelu(h @ w2 + b2, approximate=False)
        h = h @ w3 + b3
        return h.reshape(batch, seq, out_channels)

    assert jnp.allclose(y, ref_matched(x), atol=2e-2, rtol=2e-2)
    assert jnp.allclose(y, ref_exact(x), atol=2e-1, rtol=2e-1)   # sanity vs torch ref

    # Exact-numerics mode must match the torch reference tightly.
    proj_exact = make_linear_projection(params, tanh_gelu=False, bf16_matmul=False)
    y_exact = proj_exact(x)
    jax.block_until_ready(y_exact)
    assert jnp.allclose(y_exact, ref_exact(x), atol=1e-5, rtol=1e-5)

    print("KERNEL_OK")
</pallas_src>

<mosaic_0001>
module attributes {stable_mosaic.version = 11 : i64} {
  func.func @_copy(%arg0: i32, %arg1: memref<8x128xf32, #tpu.memory_space<vmem>>, %arg2: memref<8x128xf32, #tpu.memory_space<vmem>>) attributes {dimension_semantics = [#tpu.dimension_semantics<arbitrary>], iteration_bounds = array<i64: 1>, scalar_prefetch = 0 : i64, scratch_operands = 0 : i64, tpu.core_type = #tpu.core_type<tc>, window_params = [{pipeline_mode = #tpu.pipeline_mode<synchronous>, transform_indices = @transform_0, window_bounds = array<i64: 8, 128>}, {pipeline_mode = #tpu.pipeline_mode<synchronous>, transform_indices = @transform_1, window_bounds = array<i64: 8, 128>}]} {
    %c0 = arith.constant 0 : index
    %c0_0 = arith.constant 0 : index
    %0 = vector.load %arg1[%c0, %c0_0] : memref<8x128xf32, #tpu.memory_space<vmem>>, vector<8x128xf32>
    %c0_1 = arith.constant 0 : index
    %c0_2 = arith.constant 0 : index
    %1 = vector.load %arg2[%c0_1, %c0_2] : memref<8x128xf32, #tpu.memory_space<vmem>>, vector<8x128xf32>
    tpu.vector_store %arg2[%c0_1, %c0_2], %0 {strides = array<i32>} : memref<8x128xf32, #tpu.memory_space<vmem>>, vector<8x128xf32>,
    return
  }
  func.func @transform_0(%arg0: i32) -> (i32, i32) {
    %c0_i32 = arith.constant 0 : i32
    %c0_i32_0 = arith.constant 0 : i32
    %c0_i32_1 = arith.constant 0 : i32
    return %c0_i32, %c0_i32_0 : i32, i32
  }
  func.func @transform_1(%arg0: i32) -> (i32, i32) {
    %c0_i32 = arith.constant 0 : i32
    %c0_i32_0 = arith.constant 0 : i32
    %c0_i32_1 = arith.constant 0 : i32
    return %c0_i32, %c0_i32_0 : i32, i32
  }
}

module attributes {stable_mosaic.version = 11 : i64} {
  func.func @_mlp_kernel(%arg0: i32, %arg1: memref<8x256xbf16, #tpu.memory_space<vmem>>, %arg2: memref<256x512xbf16, #tpu.memory_space<vmem>>, %arg3: memref<1x512xf32, #tpu.memory_space<vmem>>, %arg4: memref<512x512xbf16, #tpu.memory_space<vmem>>, %arg5: memref<1x512xf32, #tpu.memory_space<vmem>>, %arg6: memref<512x512xbf16, #tpu.memory_space<vmem>>, %arg7: memref<1x512xf32, #tpu.memory_space<vmem>>, %arg8: memref<8x512xf32, #tpu.memory_space<vmem>>) attributes {dimension_semantics = [#tpu.dimension_semantics<parallel>], iteration_bounds = array<i64: 1>, scalar_prefetch = 0 : i64, scratch_operands = 0 : i64, tpu.core_type = #tpu.core_type<tc>, window_params = [{transform_indices = @transform_0, window_bounds = array<i64: 8, 256>}, {pipeline_mode = #tpu.pipeline_mode<synchronous>, transform_indices = @transform_1, window_bounds = array<i64: 256, 512>}, {pipeline_mode = #tpu.pipeline_mode<synchronous>, transform_indices = @transform_2, window_bounds = array<i64: 1, 512>}, {pipeline_mode = #tpu.pipeline_mode<synchronous>, transform_indices = @transform_3, window_bounds = array<i64: 512, 512>}, {pipeline_mode = #tpu.pipeline_mode<synchronous>, transform_indices = @transform_4, window_bounds = array<i64: 1, 512>}, {pipeline_mode = #tpu.pipeline_mode<synchronous>, transform_indices = @transform_5, window_bounds = array<i64: 512, 512>}, {pipeline_mode = #tpu.pipeline_mode<synchronous>, transform_indices = @transform_6, window_bounds = array<i64: 1, 512>}, {transform_indices = @transform_7, window_bounds = array<i64: 8, 512>}]} {
    %c0 = arith.constant 0 : index
    %c0_0 = arith.constant 0 : index
    %0 = vector.load %arg1[%c0, %c0_0] : memref<8x256xbf16, #tpu.memory_space<vmem>>, vector<8x256xbf16>
    %c0_1 = arith.constant 0 : index
    %c0_2 = arith.constant 0 : index
    %1 = vector.load %arg2[%c0_1, %c0_2] : memref<256x512xbf16, #tpu.memory_space<vmem>>, vector<256x512xbf16>
    %cst = arith.constant dense<0.000000e+00> : vector<8x512xf32>
    %2 = tpu.matmul %0, %1, %cst {dimension_numbers = #tpu.dot_dimension_numbers<[1], [0], [0], [1], [0, 0, 1, 1], [], []>} : vector<8x256xbf16>, vector<256x512xbf16>, vector<8x512xf32> -> vector<8x512xf32>
    %c0_3 = arith.constant 0 : index
    %c0_4 = arith.constant 0 : index
    %3 = vector.load %arg3[%c0_3, %c0_4] : memref<1x512xf32, #tpu.memory_space<vmem>>, vector<1x512xf32>
    %4 = vector.broadcast %3 : vector<1x512xf32> to vector<8x512xf32>
    %5 = arith.addf %2, %4 : vector<8x512xf32>
    %cst_5 = arith.constant 5.000000e-01 : f32
    %6 = vector.broadcast %cst_5 : f32 to vector<8x512xf32>
    %7 = arith.mulf %6, %5 : vector<8x512xf32>
    %cst_6 = arith.constant 4.471500e-02 : f32
    %8 = vector.broadcast %cst_6 : f32 to vector<8x512xf32>
    %9 = arith.mulf %8, %5 : vector<8x512xf32>
    %10 = arith.mulf %9, %5 : vector<8x512xf32>
    %11 = arith.mulf %10, %5 : vector<8x512xf32>
    %12 = arith.addf %5, %11 : vector<8x512xf32>
    %cst_7 = arith.constant 0.797884583 : f32
    %13 = vector.broadcast %cst_7 : f32 to vector<8x512xf32>
    %14 = arith.mulf %13, %12 : vector<8x512xf32>
    %15 = math.tanh %14 : vector<8x512xf32>
    %cst_8 = arith.constant 1.000000e+00 : f32
    %16 = vector.broadcast %cst_8 : f32 to vector<8x512xf32>
    %17 = arith.addf %16, %15 : vector<8x512xf32>
    %18 = arith.mulf %7, %17 : vector<8x512xf32>
    %19 = arith.truncf %18 : vector<8x512xf32> to vector<8x512xbf16>
    %c0_9 = arith.constant 0 : index
    %c0_10 = arith.constant 0 : index
    %20 = vector.load %arg4[%c0_9, %c0_10] : memref<512x512xbf16, #tpu.memory_space<vmem>>, vector<512x512xbf16>
    %cst_11 = arith.constant dense<0.000000e+00> : vector<8x512xf32>
    %21 = tpu.matmul %19, %20, %cst_11 {dimension_numbers = #tpu.dot_dimension_numbers<[1], [0], [0], [1], [0, 0, 1, 1], [], []>} : vector<8x512xbf16>, vector<512x512xbf16>, vector<8x512xf32> -> vector<8x512xf32>
    %c0_12 = arith.constant 0 : index
    %c0_13 = arith.constant 0 : index
    %22 = vector.load %arg5[%c0_12, %c0_13] : memref<1x512xf32, #tpu.memory_space<vmem>>, vector<1x512xf32>
    %23 = vector.broadcast %22 : vector<1x512xf32> to vector<8x512xf32>
    %24 = arith.addf %21, %23 : vector<8x512xf32>
    %cst_14 = arith.constant 5.000000e-01 : f32
    %25 = vector.broadcast %cst_14 : f32 to vector<8x512xf32>
    %26 = arith.mulf %25, %24 : vector<8x512xf32>
    %cst_15 = arith.constant 4.471500e-02 : f32
    %27 = vector.broadcast %cst_15 : f32 to vector<8x512xf32>
    %28 = arith.mulf %27, %24 : vector<8x512xf32>
    %29 = arith.mulf %28, %24 : vector<8x512xf32>
    %30 = arith.mulf %29, %24 : vector<8x512xf32>
    %31 = arith.addf %24, %30 : vector<8x512xf32>
    %cst_16 = arith.constant 0.797884583 : f32
    %32 = vector.broadcast %cst_16 : f32 to vector<8x512xf32>
    %33 = arith.mulf %32, %31 : vector<8x512xf32>
    %34 = math.tanh %33 : vector<8x512xf32>
    %cst_17 = arith.constant 1.000000e+00 : f32
    %35 = vector.broadcast %cst_17 : f32 to vector<8x512xf32>
    %36 = arith.addf %35, %34 : vector<8x512xf32>
    %37 = arith.mulf %26, %36 : vector<8x512xf32>
    %38 = arith.truncf %37 : vector<8x512xf32> to vector<8x512xbf16>
    %c0_18 = arith.constant 0 : index
    %c0_19 = arith.constant 0 : index
    %39 = vector.load %arg6[%c0_18, %c0_19] : memref<512x512xbf16, #tpu.memory_space<vmem>>, vector<512x512xbf16>
    %cst_20 = arith.constant dense<0.000000e+00> : vector<8x512xf32>
    %40 = tpu.matmul %38, %39, %cst_20 {dimension_numbers = #tpu.dot_dimension_numbers<[1], [0], [0], [1], [0, 0, 1, 1], [], []>} : vector<8x512xbf16>, vector<512x512xbf16>, vector<8x512xf32> -> vector<8x512xf32>
    %c0_21 = arith.constant 0 : index
    %c0_22 = arith.constant 0 : index
    %41 = vector.load %arg7[%c0_21, %c0_22] : memref<1x512xf32, #tpu.memory_space<vmem>>, vector<1x512xf32>
    %42 = vector.broadcast %41 : vector<1x512xf32> to vector<8x512xf32>
    %43 = arith.addf %40, %42 : vector<8x512xf32>
    %c0_23 = arith.constant 0 : index
    %c0_24 = arith.constant 0 : index
    %44 = vector.load %arg8[%c0_23, %c0_24] : memref<8x512xf32, #tpu.memory_space<vmem>>, vector<8x512xf32>
    tpu.vector_store %arg8[%c0_23, %c0_24], %43 {strides = array<i32>} : memref<8x512xf32, #tpu.memory_space<vmem>>, vector<8x512xf32>,
    return
  }
  func.func @transform_0(%arg0: i32) -> (i32, i32) {
    %c0_i32 = arith.constant 0 : i32
    %c0_i32_0 = arith.constant 0 : i32
    return %arg0, %c0_i32 : i32, i32
  }
  func.func @transform_1(%arg0: i32) -> (i32, i32) {
    %c0_i32 = arith.constant 0 : i32
    %c0_i32_0 = arith.constant 0 : i32
    %c0_i32_1 = arith.constant 0 : i32
    return %c0_i32, %c0_i32_0 : i32, i32
  }
  func.func @transform_2(%arg0: i32) -> (i32, i32) {
    %c0_i32 = arith.constant 0 : i32
    %c0_i32_0 = arith.constant 0 : i32
    %c0_i32_1 = arith.constant 0 : i32
    return %c0_i32, %c0_i32_0 : i32, i32
  }
  func.func @transform_3(%arg0: i32) -> (i32, i32) {
    %c0_i32 = arith.constant 0 : i32
    %c0_i32_0 = arith.constant 0 : i32
    %c0_i32_1 = arith.constant 0 : i32
    return %c0_i32, %c0_i32_0 : i32, i32
  }
  func.func @transform_4(%arg0: i32) -> (i32, i32) {
    %c0_i32 = arith.constant 0 : i32
    %c0_i32_0 = arith.constant 0 : i32
    %c0_i32_1 = arith.constant 0 : i32
    return %c0_i32, %c0_i32_0 : i32, i32
  }
  func.func @transform_5(%arg0: i32) -> (i32, i32) {
    %c0_i32 = arith.constant 0 : i32
    %c0_i32_0 = arith.constant 0 : i32
    %c0_i32_1 = arith.constant 0 : i32
    return %c0_i32, %c0_i32_0 : i32, i32
  }
  func.func @transform_6(%arg0: i32) -> (i32, i32) {
    %c0_i32 = arith.constant 0 : i32
    %c0_i32_0 = arith.constant 0 : i32
    %c0_i32_1 = arith.constant 0 : i32
    return %c0_i32, %c0_i32_0 : i32, i32
  }
  func.func @transform_7(%arg0: i32) -> (i32, i32) {
    %c0_i32 = arith.constant 0 : i32
    %c0_i32_0 = arith.constant 0 : i32
    return %arg0, %c0_i32 : i32, i32
  }
}

</mosaic_0001>

<bundles_post_ra>
// kernel: tpu_custom_call.1
= control target key start
LH: loop header
LB: loop body
LE: loop exit
PB: predicated region body
PF: predicated region fallthrough
CT: control target
= control target key end

     0   :  { %6 = vsyncpa [#allocation3], 0  ;;  %s114_s0 = inlined_call_operand.hbm [shape: f32[8,128], index: 0, kind: input, shape index: {}]   ;;  %s115_s1 = inlined_call_operand.hbm [shape: f32[8,128], index: 1, kind: output, shape index: {}]  }
   0x1   :  { %7 = vsyncpa [#allocation4], 0  ;;  %s13_s8 = sshll.u32 %s114_s0, 4  ;;  %s96_s9 = smov [#allocation2]   ;;  %s14_s8 = int_to_ptr.hbm [resolvable:$true] %s13_s8 }
   0x2   :  { %s15_s10 = sshll.u32 %s96_s9, 4  ;;  %s16_s10 = int_to_ptr.vmem [resolvable:$true] %s15_s10 }
   0x3   :  { %18 = dma.hbm_to_vmem [thread:$0]  %s14_s8, 128, %s16_s10, [#allocation3]  }
   0x4   :  { %92 = dma.done.wait [#allocation3], 128  }
   0x5   :  { %93 = vsyncadd [#allocation3], 4294967168  ;;  %s97_s11 = smov [#allocation5]   ;;  %s32_s15 = sshll.u32 %s115_s1, 4  ;;  %v23_v0 = vld [vmem:[#allocation2] sm:$0xff]  ;;  %s33_s15 = int_to_ptr.hbm [resolvable:$true] %s32_s15 }
   0x6   :  { %s30_s12 = sshll.u32 %s97_s11, 4  ;;  %24 = vst [vmem:[#allocation5] sm:$0xff] %v23_v0  ;;  %s31_s12 = int_to_ptr.vmem [resolvable:$true] %s30_s12 }
   0x7   :  { %35 = dma.vmem_to_hbm [thread:$0]  %s31_s12, 128, %s33_s15, [#allocation4]  }
   0x8   :  { %94 = dma.done.wait [#allocation4], 128  }
   0x9   :  { %95 = vsyncadd [#allocation4], 4294967168 }
   0xa   :  { %40 = vsyncpa [#allocation3], 1 }
   0xb   :  { %41 = vsyncpa [#allocation4], 1 }

// kernel: apply.1
= control target key start
LH: loop header
LB: loop body
LE: loop exit
PB: predicated region body
PF: predicated region fallthrough
CT: control target
= control target key end

     0   :  { %12 = vsyncpa [#allocation3], 0  ;;  %s4561_s0 = inlined_call_operand.vmem [shape: bf16[8,256], index: 0, kind: input, shape index: {}]   ;;  %s4562_s1 = inlined_call_operand.hbm [shape: bf16[256,512], index: 1, kind: input, shape index: {}]   ;;  %s4563_s2 = inlined_call_operand.vmem [shape: f32[1,512], index: 2, kind: input, shape index: {}]   ;;  %s4564_s3 = inlined_call_operand.hbm [shape: bf16[512,512], index: 3, kind: input, shape index: {}]   ;;  %s4565_s4 = inlined_call_operand.vmem [shape: f32[1,512], index: 4, kind: input, shape index: {}]   ;;  %s4566_s5 = inlined_call_operand.hbm [shape: bf16[512,512], index: 5, kind: input, shape index: {}]   ;;  %s4567_s6 = inlined_call_operand.vmem [shape: f32[1,512], index: 6, kind: input, shape index: {}]   ;;  %s4568_s7 = inlined_call_operand.vmem [shape: f32[8,512], index: 7, kind: output, shape index: {}]  }
   0x1   :  { %13 = vsyncpa [#allocation5], 0  ;;  %s35_s26 = sshll.u32 %s4564_s3, 4  ;;  %s4338_s27 = smov [#allocation4]   ;;  %s36_s26 = int_to_ptr.hbm [resolvable:$true] %s35_s26 }
   0x2   :  { %s37_s28 = sshll.u32 %s4338_s27, 4  ;;  %s20_s8 = sshll.u32 %s4562_s1, 4  ;;  %s38_s28 = int_to_ptr.vmem [resolvable:$true] %s37_s28  ;;  %s21_s8 = int_to_ptr.hbm [resolvable:$true] %s20_s8 }
   0x3   :  { %s4339_s9 = smov 256   ;;  %s4340_s10 = smov 16  }
   0x4   :  { %43 = dma.hbm_to_vmem [thread:$0]  %s36_s26, 16384, %s38_s28, [#allocation5], %s4339_s9, %s4339_s9, %s4340_s10  }
   0x5   :  { %s4341_s11 = smov [#allocation2]   ;;  %s50_s15 = sshll.u32 %s4566_s5, 4  ;;  %s51_s15 = int_to_ptr.hbm [resolvable:$true] %s50_s15 }
   0x6   :  { %s22_s12 = sshll.u32 %s4341_s11, 4  ;;  %s4342_s3 = smov [#allocation6]   ;;  %s23_s12 = int_to_ptr.vmem [resolvable:$true] %s22_s12 }
   0x7   :  { %28 = dma.hbm_to_vmem [thread:$0]  %s21_s8, 8192, %s23_s12, [#allocation3], %s4339_s9, %s4339_s9, %s4340_s10  }
   0x8   :  { %s52_s16 = sshll.u32 %s4342_s3, 4  ;;  %s53_s16 = int_to_ptr.vmem [resolvable:$true] %s52_s16 }
   0x9   :  { %58 = dma.hbm_to_vmem [thread:$0]  %s51_s15, 16384, %s53_s16, [#allocation5], %s4339_s9, %s4339_s9, %s4340_s10  }
   0xa   :  { %4334 = dma.done.wait [#allocation3], 8192  }
   0xb   :  { %4335 = vsyncadd [#allocation3], 4294959104 }
   0xc   :  { %4336 = dma.done.wait [#allocation5], 32768  }
   0xd   :  { %4337 = vsyncadd [#allocation5], 4294934528  ;;  %v2755_v0 = vld [vmem:[#allocation2 + $0xe0] sm:$0xf]  ;;  %v3951_v1 = vld [vmem:[#allocation2 + $0xec] sm:$0xf0] }
   0xe   :  { %v2883_v2 = vld [vmem:[#allocation2 + $0x1e0] sm:$0xf]  ;;  %v2756_v3 = vor.u32 %v3951_v1, %v2755_v0  ;;  %v3983_v4 = vld [vmem:[#allocation2 + $0x1ec] sm:$0xf0]  ;;  %v3949_v5 = vld [vmem:[#allocation2 + $0xe4] sm:$0xf] }
   0xf   :  { %v2757_v6 = vld [vmem:[#allocation2 + $0xf0] sm:$0xf0]  ;;  %v2884_v7 = vor.u32 %v3983_v4, %v2883_v2  ;;  %v3981_v9 = vld [vmem:[#allocation2 + $0x1e4] sm:$0xf]  ;;  %v2739_v11 = vld [vmem:[#allocation2 + $0xc0] sm:$0xf] }
  0x10   :  { %v2760_v8 = vor.u32 %v3949_v5, %v2757_v6  ;;  %v2885_v10 = vld [vmem:[#allocation2 + $0x1f0] sm:$0xf0]  ;;  %475 = vmatpush.bf16.msra.mxu0 %v2756_v3  ;;  %v3947_v13 = vld [vmem:[#allocation2 + $0xcc] sm:$0xf0]  ;;  %v2867_v14 = vld [vmem:[#allocation2 + $0x1c0] sm:$0xf] }
  0x11   :  { %v2888_v12 = vor.u32 %v3981_v9, %v2885_v10  ;;  %v3979_v15 = vld [vmem:[#allocation2 + $0x1cc] sm:$0xf0]  ;;  %488 = vmatpush.bf16.msra.mxu1 %v2884_v7  ;;  %v2740_v16 = vor.u32 %v3947_v13, %v2739_v11  ;;  %v3945_v18 = vld [vmem:[#allocation2 + $0xc4] sm:$0xf]  ;;  %v2741_v19 = vld [vmem:[#allocation2 + $0xd0] sm:$0xf0] }
  0x12   :  { %501 = vmatpush.bf16.msra.mxu2 %v2760_v8  ;;  %v2868_v17 = vor.u32 %v3979_v15, %v2867_v14  ;;  %v3977_v20 = vld [vmem:[#allocation2 + $0x1c4] sm:$0xf]  ;;  %v2744_v21 = vor.u32 %v3945_v18, %v2741_v19  ;;  %v2869_v22 = vld [vmem:[#allocation2 + $0x1d0] sm:$0xf0]  ;;  %v2723_v23 = vld [vmem:[#allocation2 + $0xa0] sm:$0xf] }
  0x13   :  { %514 = vmatpush.bf16.msra.mxu3 %v2888_v12  ;;  %v3943_v24 = vld [vmem:[#allocation2 + $0xac] sm:$0xf0]  ;;  %v2872_v25 = vor.u32 %v3977_v20, %v2869_v22  ;;  %v2851_v26 = vld [vmem:[#allocation2 + $0x1a0] sm:$0xf]  ;;  %v3941_v28 = vld [vmem:[#allocation2 + $0xa4] sm:$0xf] }
  0x14   :  { %v3975_v27 = vld [vmem:[#allocation2 + $0x1ac] sm:$0xf0]  ;;  %476 = vmatpush.bf16.msra.mxu0 %v2740_v16  ;;  %v2724_v29 = vor.u32 %v3943_v24, %v2723_v23  ;;  %v2725_v30 = vld [vmem:[#allocation2 + $0xb0] sm:$0xf0]  ;;  %v3973_v31 = vld [vmem:[#allocation2 + $0x1a4] sm:$0xf] }
  0x15   :  { %v2853_v32 = vld [vmem:[#allocation2 + $0x1b0] sm:$0xf0]  ;;  %489 = vmatpush.bf16.msra.mxu1 %v2868_v17  ;;  %v2852_v33 = vor.u32 %v3975_v27, %v2851_v26  ;;  %v2728_v34 = vor.u32 %v3941_v28, %v2725_v30  ;;  %v2707_v35 = vld [vmem:[#allocation2 + $0x80] sm:$0xf]  ;;  %v3939_v36 = vld [vmem:[#allocation2 + $0x8c] sm:$0xf0] }
  0x16   :  { %502 = vmatpush.bf16.msra.mxu2 %v2744_v21  ;;  %v2835_v37 = vld [vmem:[#allocation2 + $0x180] sm:$0xf]  ;;  %v2856_v38 = vor.u32 %v3973_v31, %v2853_v32  ;;  %v3971_v39 = vld [vmem:[#allocation2 + $0x18c] sm:$0xf0]  ;;  %v3937_v40 = vld [vmem:[#allocation2 + $0x84] sm:$0xf]  ;;  %v2708_v44 = vor.u32 %v3939_v36, %v2707_v35 }
  0x17   :  { %515 = vmatpush.bf16.msra.mxu3 %v2872_v25  ;;  %v2709_v41 = vld [vmem:[#allocation2 + $0x90] sm:$0xf0]  ;;  %v3969_v42 = vld [vmem:[#allocation2 + $0x184] sm:$0xf]  ;;  %v2836_v45 = vor.u32 %v3971_v39, %v2835_v37  ;;  %v2691_v47 = vld [vmem:[#allocation2 + $0x60] sm:$0xf] }
  0x18   :  { %v2837_v43 = vld [vmem:[#allocation2 + $0x190] sm:$0xf0]  ;;  %477 = vmatpush.bf16.msra.mxu0 %v2724_v29  ;;  %v2712_v46 = vor.u32 %v3937_v40, %v2709_v41  ;;  %v3935_v48 = vld [vmem:[#allocation2 + $0x6c] sm:$0xf0]  ;;  %v2819_v49 = vld [vmem:[#allocation2 + $0x160] sm:$0xf] }
  0x19   :  { %490 = vmatpush.bf16.msra.mxu1 %v2852_v33  ;;  %v2840_v50 = vor.u32 %v3969_v42, %v2837_v43  ;;  %v3967_v51 = vld [vmem:[#allocation2 + $0x16c] sm:$0xf0]  ;;  %v3933_v52 = vld [vmem:[#allocation2 + $0x64] sm:$0xf]  ;;  %v2693_v53 = vld [vmem:[#allocation2 + $0x70] sm:$0xf0]  ;;  %v2692_v56 = vor.u32 %v3935_v48, %v2691_v47 }
  0x1a   :  { %503 = vmatpush.bf16.msra.mxu2 %v2728_v34  ;;  %v3965_v54 = vld [vmem:[#allocation2 + $0x164] sm:$0xf]  ;;  %v2821_v55 = vld [vmem:[#allocation2 + $0x170] sm:$0xf0]  ;;  %v2820_v57 = vor.u32 %v3967_v51, %v2819_v49  ;;  %v2696_v58 = vor.u32 %v3933_v52, %v2693_v53  ;;  %v2675_v59 = vld [vmem:[#allocation2 + $0x40] sm:$0xf] }
  0x1b   :  { %516 = vmatpush.bf16.msra.mxu3 %v2856_v38  ;;  %v3931_v60 = vld [vmem:[#allocation2 + $0x4c] sm:$0xf0]  ;;  %v2803_v61 = vld [vmem:[#allocation2 + $0x140] sm:$0xf]  ;;  %v2824_v62 = vor.u32 %v3965_v54, %v2821_v55  ;;  %v3929_v0 = vld [vmem:[#allocation2 + $0x44] sm:$0xf] }
  0x1c   :  { %478 = vmatpush.bf16.msra.mxu0 %v2708_v44  ;;  %v3963_v63 = vld [vmem:[#allocation2 + $0x14c] sm:$0xf0]  ;;  %v2677_v1 = vld [vmem:[#allocation2 + $0x50] sm:$0xf0]  ;;  %v3961_v2 = vld [vmem:[#allocation2 + $0x144] sm:$0xf]  ;;  %v2676_v4 = vor.u32 %v3931_v60, %v2675_v59 }
  0x1d   :  { %491 = vmatpush.bf16.msra.mxu1 %v2836_v45  ;;  %v2805_v3 = vld [vmem:[#allocation2 + $0x150] sm:$0xf0]  ;;  %v2804_v5 = vor.u32 %v3963_v63, %v2803_v61  ;;  %v2680_v6 = vor.u32 %v3929_v0, %v2677_v1  ;;  %v2659_v7 = vld [vmem:[#allocation2 + $0x20] sm:$0xf]  ;;  %v3927_v8 = vld [vmem:[#allocation2 + $0x2c] sm:$0xf0] }
  0x1e   :  { %504 = vmatpush.bf16.msra.mxu2 %v2712_v46  ;;  %v2787_v9 = vld [vmem:[#allocation2 + $0x120] sm:$0xf]  ;;  %v2808_v10 = vor.u32 %v3961_v2, %v2805_v3  ;;  %v3959_v11 = vld [vmem:[#allocation2 + $0x12c] sm:$0xf0]  ;;  %v3925_v12 = vld [vmem:[#allocation2 + $0x24] sm:$0xf]  ;;  %v2660_v16 = vor.u32 %v3927_v8, %v2659_v7 }
  0x1f   :  { %517 = vmatpush.bf16.msra.mxu3 %v2840_v50  ;;  %v2661_v13 = vld [vmem:[#allocation2 + $0x30] sm:$0xf0]  ;;  %v3957_v14 = vld [vmem:[#allocation2 + $0x124] sm:$0xf]  ;;  %v2643_v17 = vld [vmem:[#allocation2] sm:$0xf]  ;;  %v2788_v20 = vor.u32 %v3959_v11, %v2787_v9 }
  0x20   :  { %479 = vmatpush.bf16.msra.mxu0 %v2692_v56  ;;  %v2789_v15 = vld [vmem:[#allocation2 + $0x130] sm:$0xf0]  ;;  %v3923_v18 = vld [vmem:[#allocation2 + $0xc] sm:$0xf0]  ;;  %v2771_v19 = vld [vmem:[#allocation2 + $0x100] sm:$0xf]  ;;  %v2664_v21 = vor.u32 %v3925_v12, %v2661_v13 }
  0x21   :  { %492 = vmatpush.bf16.msra.mxu1 %v2820_v57  ;;  %v3955_v22 = vld [vmem:[#allocation2 + $0x10c] sm:$0xf0]  ;;  %v3921_v23 = vld [vmem:[#allocation2 + $0x4] sm:$0xf]  ;;  %v2792_v25 = vor.u32 %v3957_v14, %v2789_v15  ;;  %v2645_v26 = vld [vmem:[#allocation2 + $0x10] sm:$0xf0]  ;;  %v2644_v32 = vor.u32 %v3923_v18, %v2643_v17 }
  0x22   :  { %505 = vmatpush.bf16.msra.mxu2 %v2696_v58  ;;  %v73_v24 = vld [vmem:[%s4561_s0] sm:$0xff]  ;;  %v2773_v28 = vld [vmem:[#allocation2 + $0x110] sm:$0xf0]  ;;  %v2763_v29 = vld [vmem:[#allocation2 + $0xe8] sm:$0xf]  ;;  %v2772_v37 = vor.u32 %v3955_v22, %v2771_v19  ;;  %v2648_v38 = vor.u32 %v3921_v23, %v2645_v26 }
  0x23   :  { %518 = vmatpush.bf16.msra.mxu3 %v2824_v62  ;;  %v3953_v27 = vld [vmem:[#allocation2 + $0x104] sm:$0xf]  ;;  %v3952_v30 = vld [vmem:[#allocation2 + $0xf4] sm:$0xf0]  ;;  %v2891_v31 = vld [vmem:[#allocation2 + $0x1e8] sm:$0xf]  ;;  %v149_v36 = vunpack.c.l.b16 %v73_v24  ;;  %v150_v41 = vunpack.c.h.b16 %v73_v24 }
  0x24   :  { %480 = vmatpush.bf16.msra.mxu0 %v2676_v4  ;;  %v3984_v33 = vld [vmem:[#allocation2 + $0x1f4] sm:$0xf0]  ;;  %v3950_v34 = vld [vmem:[#allocation2 + $0xec] sm:$0xf]  ;;  %v2765_v35 = vld [vmem:[#allocation2 + $0xf8] sm:$0xf0]  ;;  %v2776_v42 = vor.u32 %v3953_v27, %v2773_v28  ;;  %v2764_v43 = vor.u32 %v3952_v30, %v2763_v29 }
  0x25   :  { %493 = vmatpush.bf16.msra.mxu1 %v2804_v5  ;;  %v3982_v39 = vld [vmem:[#allocation2 + $0x1ec] sm:$0xf]  ;;  %v2893_v40 = vld [vmem:[#allocation2 + $0x1f8] sm:$0xf0]  ;;  %v2892_v44 = vor.u32 %v3984_v33, %v2891_v31  ;;  %v2768_v45 = vor.u32 %v3950_v34, %v2765_v35  ;;  %v2747_v46 = vld [vmem:[#allocation2 + $0xc8] sm:$0xf]  ;;  %v4395_v50 = vpack.c.b16 %v149_v36, %v149_v36  ;;  %v4397_v54 = vpack.c.b16 %v150_v41, %v150_v41 }
  0x26   :  { %506 = vmatpush.bf16.msra.mxu2 %v2680_v6  ;;  %v3948_v47 = vld [vmem:[#allocation2 + $0xd4] sm:$0xf0]  ;;  %v2875_v48 = vld [vmem:[#allocation2 + $0x1c8] sm:$0xf]  ;;  %v2896_v49 = vor.u32 %v3982_v39, %v2893_v40  ;;  %v3946_v52 = vld [vmem:[#allocation2 + $0xcc] sm:$0xf] }
  0x27   :  { %519 = vmatpush.bf16.msra.mxu3 %v2808_v10  ;;  %v3980_v51 = vld [vmem:[#allocation2 + $0x1d4] sm:$0xf0]  ;;  %v2749_v53 = vld [vmem:[#allocation2 + $0xd8] sm:$0xf0]  ;;  %v3978_v55 = vld [vmem:[#allocation2 + $0x1cc] sm:$0xf]  ;;  %v2748_v57 = vor.u32 %v3948_v47, %v2747_v46 }
  0x28   :  { %481 = vmatpush.bf16.msra.mxu0 %v2660_v16  ;;  %v2877_v56 = vld [vmem:[#allocation2 + $0x1d8] sm:$0xf0]  ;;  %v2876_v58 = vor.u32 %v3980_v51, %v2875_v48  ;;  %v2752_v59 = vor.u32 %v3946_v52, %v2749_v53  ;;  %v2731_v60 = vld [vmem:[#allocation2 + $0xa8] sm:$0xf]  ;;  %v3944_v61 = vld [vmem:[#allocation2 + $0xb4] sm:$0xf0] }
  0x29   :  { %494 = vmatpush.bf16.msra.mxu1 %v2788_v20  ;;  %v2859_v62 = vld [vmem:[#allocation2 + $0x1a8] sm:$0xf]  ;;  %v2880_v63 = vor.u32 %v3978_v55, %v2877_v56  ;;  %v3976_v0 = vld [vmem:[#allocation2 + $0x1b4] sm:$0xf0]  ;;  %v3942_v1 = vld [vmem:[#allocation2 + $0xac] sm:$0xf]  ;;  %v2732_v5 = vor.u32 %v3944_v61, %v2731_v60 }
  0x2a   :  { %507 = vmatpush.bf16.msra.mxu2 %v2664_v21  ;;  %v2733_v2 = vld [vmem:[#allocation2 + $0xb8] sm:$0xf0]  ;;  %v3974_v3 = vld [vmem:[#allocation2 + $0x1ac] sm:$0xf]  ;;  %v2860_v6 = vor.u32 %v3976_v0, %v2859_v62  ;;  %v2715_v8 = vld [vmem:[#allocation2 + $0x88] sm:$0xf] }
  0x2b   :  { %520 = vmatpush.bf16.msra.mxu3 %v2792_v25  ;;  %v2861_v4 = vld [vmem:[#allocation2 + $0x1b8] sm:$0xf0]  ;;  %v2736_v7 = vor.u32 %v3942_v1, %v2733_v2  ;;  %v3940_v9 = vld [vmem:[#allocation2 + $0x94] sm:$0xf0]  ;;  %v2843_v10 = vld [vmem:[#allocation2 + $0x188] sm:$0xf] }
  0x2c   :  { %482 = vmatpush.bf16.msra.mxu0 %v2644_v32  ;;  %v2864_v11 = vor.u32 %v3974_v3, %v2861_v4  ;;  %v3972_v12 = vld [vmem:[#allocation2 + $0x194] sm:$0xf0]  ;;  %v3938_v13 = vld [vmem:[#allocation2 + $0x8c] sm:$0xf]  ;;  %v2717_v14 = vld [vmem:[#allocation2 + $0x98] sm:$0xf0]  ;;  %v2716_v17 = vor.u32 %v3940_v9, %v2715_v8 }
  0x2d   :  { %495 = vmatpush.bf16.msra.mxu1 %v2772_v37  ;;  %v3970_v15 = vld [vmem:[#allocation2 + $0x18c] sm:$0xf]  ;;  %v2845_v16 = vld [vmem:[#allocation2 + $0x198] sm:$0xf0]  ;;  %v2844_v18 = vor.u32 %v3972_v12, %v2843_v10  ;;  %v2720_v19 = vor.u32 %v3938_v13, %v2717_v14  ;;  %v2699_v20 = vld [vmem:[#allocation2 + $0x68] sm:$0xf] }
  0x2e   :  { %508 = vmatpush.bf16.msra.mxu2 %v2648_v38  ;;  %v3936_v21 = vld [vmem:[#allocation2 + $0x74] sm:$0xf0]  ;;  %v2827_v22 = vld [vmem:[#allocation2 + $0x168] sm:$0xf]  ;;  %v2848_v23 = vor.u32 %v3970_v15, %v2845_v16  ;;  %v3934_v25 = vld [vmem:[#allocation2 + $0x6c] sm:$0xf] }
  0x2f   :  { %521 = vmatpush.bf16.msra.mxu3 %v2776_v42  ;;  %483 = vmatmul.bf16.vlgmr.msra.gmra.mxu0 %v4395_v50  ;;  %v3968_v24 = vld [vmem:[#allocation2 + $0x174] sm:$0xf0]  ;;  %v2701_v26 = vld [vmem:[#allocation2 + $0x78] sm:$0xf0]  ;;  %v3966_v27 = vld [vmem:[#allocation2 + $0x16c] sm:$0xf]  ;;  %v2700_v29 = vor.u32 %v3936_v21, %v2699_v20 }
  0x30   :  { %527 = vmatpush.bf16.msrb.mxu0 %v2764_v43  ;;  %496 = vmatmul.bf16.vlgmr.msra.gmra.mxu1 %v4397_v54  ;;  %v2829_v28 = vld [vmem:[#allocation2 + $0x178] sm:$0xf0]  ;;  %v2828_v30 = vor.u32 %v3968_v24, %v2827_v22  ;;  %v2704_v31 = vor.u32 %v3934_v25, %v2701_v26  ;;  %v2683_v32 = vld [vmem:[#allocation2 + $0x48] sm:$0xf]  ;;  %v3932_v33 = vld [vmem:[#allocation2 + $0x54] sm:$0xf0] }
  0x31   :  { %540 = vmatpush.bf16.msrb.mxu1 %v2892_v44  ;;  %509 = vmatmul.bf16.vlgmr.msra.gmra.mxu2 %v4395_v50  ;;  %v2811_v34 = vld [vmem:[#allocation2 + $0x148] sm:$0xf]  ;;  %v2832_v35 = vor.u32 %v3966_v27, %v2829_v28  ;;  %v3964_v36 = vld [vmem:[#allocation2 + $0x154] sm:$0xf0]  ;;  %v3930_v37 = vld [vmem:[#allocation2 + $0x4c] sm:$0xf]  ;;  %v2684_v41 = vor.u32 %v3932_v33, %v2683_v32 }
  0x32   :  { %553 = vmatpush.bf16.msrb.mxu2 %v2768_v45  ;;  %522 = vmatmul.bf16.vlgmr.msra.gmra.mxu3 %v4397_v54  ;;  %v2685_v38 = vld [vmem:[#allocation2 + $0x58] sm:$0xf0]  ;;  %v3962_v39 = vld [vmem:[#allocation2 + $0x14c] sm:$0xf]  ;;  %v2812_v42 = vor.u32 %v3964_v36, %v2811_v34  ;;  %v2667_v44 = vld [vmem:[#allocation2 + $0x28] sm:$0xf] }
  0x33   :  { %566 = vmatpush.bf16.msrb.mxu3 %v2896_v49  ;;  %v2813_v40 = vld [vmem:[#allocation2 + $0x158] sm:$0xf0]  ;;  %v2688_v43 = vor.u32 %v3930_v37, %v2685_v38  ;;  %v3928_v45 = vld [vmem:[#allocation2 + $0x34] sm:$0xf0]  ;;  %v2795_v46 = vld [vmem:[#allocation2 + $0x128] sm:$0xf] }
  0x34   :  { %528 = vmatpush.bf16.msrb.mxu0 %v2748_v57  ;;  %v2816_v47 = vor.u32 %v3962_v39, %v2813_v40  ;;  %v3960_v48 = vld [vmem:[#allocation2 + $0x134] sm:$0xf0]  ;;  %v3926_v49 = vld [vmem:[#allocation2 + $0x2c] sm:$0xf]  ;;  %v2669_v51 = vld [vmem:[#allocation2 + $0x38] sm:$0xf0]  ;;  %v2668_v55 = vor.u32 %v3928_v45, %v2667_v44 }
  0x35   :  { %541 = vmatpush.bf16.msrb.mxu1 %v2876_v58  ;;  %v3958_v52 = vld [vmem:[#allocation2 + $0x12c] sm:$0xf]  ;;  %v2797_v53 = vld [vmem:[#allocation2 + $0x138] sm:$0xf0]  ;;  %v2651_v56 = vld [vmem:[#allocation2 + $0x8] sm:$0xf]  ;;  %v2796_v57 = vor.u32 %v3960_v48, %v2795_v46  ;;  %v2672_v58 = vor.u32 %v3926_v49, %v2669_v51 }
  0x36   :  { %554 = vmatpush.bf16.msrb.mxu2 %v2752_v59  ;;  %v3924_v59 = vld [vmem:[#allocation2 + $0x14] sm:$0xf0]  ;;  %v2779_v60 = vld [vmem:[#allocation2 + $0x108] sm:$0xf]  ;;  %v2800_v62 = vor.u32 %v3958_v52, %v2797_v53  ;;  %v2653_v0 = vld [vmem:[#allocation2 + $0x18] sm:$0xf0] }
  0x37   :  { %567 = vmatpush.bf16.msrb.mxu3 %v2880_v63  ;;  %v3956_v61 = vld [vmem:[#allocation2 + $0x114] sm:$0xf0]  ;;  %v3922_v63 = vld [vmem:[#allocation2 + $0xc] sm:$0xf]  ;;  %v2781_v2 = vld [vmem:[#allocation2 + $0x118] sm:$0xf0] }
  0x38   :  { %529 = vmatpush.bf16.msrb.mxu0 %v2732_v5  ;;  %v3954_v1 = vld [vmem:[#allocation2 + $0x10c] sm:$0xf]  ;;  %v3011_v3 = vld [vmem:[#allocation4 + $0xe0] sm:$0xf]  ;;  %v4015_v4 = vld [vmem:[#allocation4 + $0xec] sm:$0xf0]  ;;  %v2652_v5 = vor.u32 %v3924_v59, %v2651_v56  ;;  %v2780_v8 = vor.u32 %v3956_v61, %v2779_v60  ;;  %v2656_v9 = vor.u32 %v3922_v63, %v2653_v0 }
  0x39   :  { %542 = vmatpush.bf16.msrb.mxu1 %v2860_v6  ;;  %v3139_v6 = vld [vmem:[#allocation4 + $0x1e0] sm:$0xf]  ;;  %v2784_v10 = vor.u32 %v3954_v1, %v2781_v2  ;;  %v4079_v13 = vld [vmem:[#allocation4 + $0x2ec] sm:$0xf0]  ;;  %v4013_v49 = vld [vmem:[#allocation4 + $0xe4] sm:$0xf] }
  0x3a   :  { %555 = vmatpush.bf16.msrb.mxu2 %v2736_v7  ;;  %v4047_v7 = vld [vmem:[#allocation4 + $0x1ec] sm:$0xf0]  ;;  %v3267_v12 = vld [vmem:[#allocation4 + $0x2e0] sm:$0xf]  ;;  %v3013_v51 = vld [vmem:[#allocation4 + $0xf0] sm:$0xf0] }
  0x3b   :  { %568 = vmatpush.bf16.msrb.mxu3 %v2864_v11  ;;  %v3012_v11 = vor.u32 %v4015_v4, %v3011_v3  ;;  %v2995_v14 = vld [vmem:[#allocation4 + $0xc0] sm:$0xf]  ;;  %v4011_v15 = vld [vmem:[#allocation4 + $0xcc] sm:$0xf0]  ;;  %v3140_v16 = vor.u32 %v4047_v7, %v3139_v6  ;;  %v3016_v53 = vor.u32 %v4013_v49, %v3013_v51  ;;  %v4009_v60 = vld [vmem:[#allocation4 + $0xc4] sm:$0xf] }
  0x3c   :  { %530 = vmatpush.bf16.msrb.mxu0 %v2716_v17  ;;  %v3123_v17 = vld [vmem:[#allocation4 + $0x1c0] sm:$0xf]  ;;  %v2996_v20 = vor.u32 %v4011_v15, %v2995_v14  ;;  %v4007_v22 = vld [vmem:[#allocation4 + $0xac] sm:$0xf0]  ;;  %v3141_v7 = vld [vmem:[#allocation4 + $0x1f0] sm:$0xf0] }
  0x3d   :  { %543 = vmatpush.bf16.msrb.mxu1 %v2844_v18  ;;  %v4043_v18 = vld [vmem:[#allocation4 + $0x1cc] sm:$0xf0]  ;;  %v2979_v21 = vld [vmem:[#allocation4 + $0xa0] sm:$0xf] }
  0x3e   :  { %556 = vmatpush.bf16.msrb.mxu2 %v2720_v19  ;;  %v3268_v19 = vor.u32 %v4079_v13, %v3267_v12  ;;  %v3107_v24 = vld [vmem:[#allocation4 + $0x1a0] sm:$0xf]  ;;  %v4039_v25 = vld [vmem:[#allocation4 + $0x1ac] sm:$0xf0]  ;;  %v2980_v26 = vor.u32 %v4007_v22, %v2979_v21  ;;  %v2981_v13 = vld [vmem:[#allocation4 + $0xb0] sm:$0xf0] }
  0x3f   :  { %569 = vmatpush.bf16.msrb.mxu3 %v2848_v23  ;;  %v3124_v23 = vor.u32 %v4043_v18, %v3123_v17  ;;  %v2963_v27 = vld [vmem:[#allocation4 + $0x80] sm:$0xf]  ;;  %v4003_v28 = vld [vmem:[#allocation4 + $0x8c] sm:$0xf0]  ;;  %v4041_v17 = vld [vmem:[#allocation4 + $0x1c4] sm:$0xf] }
  0x40   :  { %531 = vmatpush.bf16.msrb.mxu0 %v2700_v29  ;;  %v3108_v29 = vor.u32 %v4039_v25, %v3107_v24  ;;  %v2964_v32 = vor.u32 %v4003_v28, %v2963_v27  ;;  %v2947_v33 = vld [vmem:[#allocation4 + $0x60] sm:$0xf]  ;;  %v3999_v34 = vld [vmem:[#allocation4 + $0x6c] sm:$0xf0]  ;;  %v2965_v25 = vld [vmem:[#allocation4 + $0x90] sm:$0xf0] }
  0x41   :  { %544 = vmatpush.bf16.msrb.mxu1 %v2828_v30  ;;  %v3091_v30 = vld [vmem:[#allocation4 + $0x180] sm:$0xf]  ;;  %v4031_v36 = vld [vmem:[#allocation4 + $0x16c] sm:$0xf0]  ;;  %v2948_v37 = vor.u32 %v3999_v34, %v2947_v33 }
  0x42   :  { %557 = vmatpush.bf16.msrb.mxu2 %v2704_v31  ;;  %v4035_v31 = vld [vmem:[#allocation4 + $0x18c] sm:$0xf0]  ;;  %v3059_v40 = vld [vmem:[#allocation4 + $0x140] sm:$0xf] }
  0x43   :  { %570 = vmatpush.bf16.msrb.mxu3 %v2832_v35  ;;  %v3092_v35 = vor.u32 %v4035_v31, %v3091_v30  ;;  %v3995_v38 = vld [vmem:[#allocation4 + $0x4c] sm:$0xf0]  ;;  %v3027_v63 = vld [vmem:[#allocation4 + $0x100] sm:$0xf]  ;;  %v3109_v31 = vld [vmem:[#allocation4 + $0x1b0] sm:$0xf0] }
  0x44   :  { %532 = vmatpush.bf16.msrb.mxu0 %v2684_v41  ;;  %v4027_v41 = vld [vmem:[#allocation4 + $0x14c] sm:$0xf0]  ;;  %v3395_v3 = vld [vmem:[#allocation4 + $0x3e0] sm:$0xf] }
  0x45   :  { %545 = vmatpush.bf16.msrb.mxu1 %v2812_v42  ;;  %v3991_v44 = vld [vmem:[#allocation4 + $0x2c] sm:$0xf0]  ;;  %v3060_v45 = vor.u32 %v4027_v41, %v3059_v40  ;;  %v3379_v15 = vld [vmem:[#allocation4 + $0x3c0] sm:$0xf]  ;;  %v3093_v41 = vld [vmem:[#allocation4 + $0x190] sm:$0xf0] }
  0x46   :  { %558 = vmatpush.bf16.msrb.mxu2 %v2688_v43  ;;  %v2915_v43 = vld [vmem:[#allocation4 + $0x20] sm:$0xf]  ;;  %v3987_v48 = vld [vmem:[#allocation4 + $0xc] sm:$0xf0] }
  0x47   :  { %571 = vmatpush.bf16.msrb.mxu3 %v2816_v47  ;;  %v2916_v46 = vor.u32 %v3991_v44, %v2915_v43  ;;  %v2899_v47 = vld [vmem:[#allocation4] sm:$0xf]  ;;  %v4023_v56 = vld [vmem:[#allocation4 + $0x12c] sm:$0xf0] }
  0x48   :  { %533 = vmatpush.bf16.msrb.mxu0 %v2668_v55  ;;  %v2900_v52 = vor.u32 %v3987_v48, %v2899_v47  ;;  %v3043_v55 = vld [vmem:[#allocation4 + $0x120] sm:$0xf]  ;;  %v4075_v59 = vld [vmem:[#allocation4 + $0x2cc] sm:$0xf0]  ;;  %v2933_v47 = vld [vmem:[#allocation4 + $0x50] sm:$0xf0] }
  0x49   :  { %546 = vmatpush.bf16.msrb.mxu1 %v2796_v57  ;;  %v3044_v57 = vor.u32 %v4023_v56, %v3043_v55  ;;  %v4019_v0 = vld [vmem:[#allocation4 + $0x10c] sm:$0xf0]  ;;  %v3219_v21 = vld [vmem:[#allocation4 + $0x280] sm:$0xf] }
  0x4a   :  { %559 = vmatpush.bf16.msrb.mxu2 %v2672_v58  ;;  %v3251_v58 = vld [vmem:[#allocation4 + $0x2c0] sm:$0xf]  ;;  %v3028_v2 = vor.u32 %v4019_v0, %v3027_v63  ;;  %v4111_v4 = vld [vmem:[#allocation4 + $0x3ec] sm:$0xf0] }
  0x4b   :  { %572 = vmatpush.bf16.msrb.mxu3 %v2800_v62  ;;  %v3252_v61 = vor.u32 %v4075_v59, %v3251_v58  ;;  %v2997_v62 = vld [vmem:[#allocation4 + $0xd0] sm:$0xf0]  ;;  %v3396_v6 = vor.u32 %v4111_v4, %v3395_v3  ;;  %v4067_v22 = vld [vmem:[#allocation4 + $0x28c] sm:$0xf0]  ;;  %v3363_v27 = vld [vmem:[#allocation4 + $0x3a0] sm:$0xf] }
  0x4c   :  { %534 = vmatpush.bf16.msrb.mxu0 %v2652_v5  ;;  %v3000_v1 = vor.u32 %v4009_v60, %v2997_v62  ;;  %v4045_v5 = vld [vmem:[#allocation4 + $0x1e4] sm:$0xf]  ;;  %v3220_v24 = vor.u32 %v4067_v22, %v3219_v21  ;;  %v4103_v28 = vld [vmem:[#allocation4 + $0x3ac] sm:$0xf0]  ;;  %v3203_v33 = vld [vmem:[#allocation4 + $0x260] sm:$0xf] }
  0x4d   :  { %547 = vmatpush.bf16.msrb.mxu1 %v2780_v8  ;;  %v3144_v8 = vor.u32 %v4045_v5, %v3141_v7  ;;  %v3364_v30 = vor.u32 %v4103_v28, %v3363_v27  ;;  %v4063_v34 = vld [vmem:[#allocation4 + $0x26c] sm:$0xf0]  ;;  %v3331_v48 = vld [vmem:[#allocation4 + $0x360] sm:$0xf]  ;;  %v3989_v59 = vld [vmem:[#allocation4 + $0x24] sm:$0xf] }
  0x4e   :  { %560 = vmatpush.bf16.msrb.mxu2 %v2656_v9  ;;  %v3235_v9 = vld [vmem:[#allocation4 + $0x2a0] sm:$0xf]  ;;  %v4059_v43 = vld [vmem:[#allocation4 + $0x24c] sm:$0xf0]  ;;  %v2901_v7 = vld [vmem:[#allocation4 + $0x10] sm:$0xf0] }
  0x4f   :  { %573 = vmatpush.bf16.msrb.mxu3 %v2784_v10  ;;  %535 = vmatmul.bf16.vlgmr.msrb.gmra.mxu0 %v4395_v50  ;;  %v4071_v10 = vld [vmem:[#allocation4 + $0x2ac] sm:$0xf0]  ;;  %v3315_v62 = vld [vmem:[#allocation4 + $0x340] sm:$0xf]  ;;  %v4073_v22 = vld [vmem:[#allocation4 + $0x2c4] sm:$0xf] }
  0x50   :  { %1397 = vmatpush.bf16.msra.mxu0 %v3012_v11  ;;  %548 = vmatmul.bf16.vlgmr.msrb.gmra.mxu1 %v4397_v54  ;;  %v4005_v11 = vld [vmem:[#allocation4 + $0xa4] sm:$0xf]  ;;  %v3236_v12 = vor.u32 %v4071_v10, %v3235_v9  ;;  %v4095_v51 = vld [vmem:[#allocation4 + $0x36c] sm:$0xf0]  ;;  %v3155_v3 = vld [vmem:[#allocation4 + $0x200] sm:$0xf] }
  0x51   :  { %1410 = vmatpush.bf16.msra.mxu1 %v3140_v16  ;;  %561 = vmatmul.bf16.vlgmr.msrb.gmra.mxu2 %v4395_v50  ;;  %v3075_v50 = vld [vmem:[#allocation4 + $0x160] sm:$0xf]  ;;  %v2984_v14 = vor.u32 %v4005_v11, %v2981_v13  ;;  %v4107_v16 = vld [vmem:[#allocation4 + $0x3cc] sm:$0xf0]  ;;  %v3332_v55 = vor.u32 %v4095_v51, %v3331_v48  ;;  %v3269_v13 = vld [vmem:[#allocation4 + $0x2f0] sm:$0xf0] }
  0x52   :  { %574 = vmatmul.bf16.vlgmr.msrb.gmra.mxu3 %v4397_v54  ;;  %1423 = vmatpush.bf16.msra.mxu2 %v3268_v19  ;;  %v2931_v54 = vld [vmem:[#allocation4 + $0x40] sm:$0xf]  ;;  %v3076_v39 = vor.u32 %v4031_v36, %v3075_v50  ;;  %v3380_v18 = vor.u32 %v4107_v16, %v3379_v15  ;;  %v3125_v19 = vld [vmem:[#allocation4 + $0x1d0] sm:$0xf0]  ;;  %v3204_v50 = vor.u32 %v4063_v34, %v3203_v33  ;;  %v4055_v58 = vld [vmem:[#allocation4 + $0x22c] sm:$0xf0] }
  0x53   :  { %v2932_v42 = vor.u32 %v3995_v38, %v2931_v54  ;;  %1436 = vmatpush.bf16.msra.mxu3 %v3396_v6  ;;  %v2949_v36 = vld [vmem:[#allocation4 + $0x70] sm:$0xf0]  ;;  %v3347_v54 = vld [vmem:[#allocation4 + $0x380] sm:$0xf]  ;;  %v4099_v38 = vld [vmem:[#allocation4 + $0x38c] sm:$0xf0] }
  0x54   :  { %1398 = vmatpush.bf16.msra.mxu0 %v2996_v20  ;;  %v3128_v20 = vor.u32 %v4041_v17, %v3125_v19  ;;  %v3348_v40 = vor.u32 %v4099_v38, %v3347_v54  ;;  %v4091_v63 = vld [vmem:[#allocation4 + $0x34c] sm:$0xf0]  ;;  %v3985_v6 = vld [vmem:[#allocation4 + $0x4] sm:$0xf]  ;;  %v4410_v10 = vld [vmem:[%s4563_s2] sm:$0xf] }
  0x55   :  { %1411 = vmatpush.bf16.msra.mxu1 %v3124_v23  ;;  %v4001_v23 = vld [vmem:[#allocation4 + $0x84] sm:$0xf]  ;;  %v3316_v4 = vor.u32 %v4091_v63, %v3315_v62  ;;  %v4051_v5 = vld [vmem:[#allocation4 + $0x20c] sm:$0xf0]  ;;  %v2904_v11 = vor.u32 %v3985_v6, %v2901_v7  ;;  %v3299_v15 = vld [vmem:[#allocation4 + $0x320] sm:$0xf] }
  0x56   :  { %1424 = vmatpush.bf16.msra.mxu2 %v3252_v61  ;;  %v2917_v61 = vld [vmem:[#allocation4 + $0x30] sm:$0xf0]  ;;  %v3156_v9 = vor.u32 %v4051_v5, %v3155_v3  ;;  %v4087_v16 = vld [vmem:[#allocation4 + $0x32c] sm:$0xf0]  ;;  %v140_v17 = vperm.slane %v4410_v10, 0  ;;  %v141_v38 = vperm.slane %v4410_v10, 1 }
  0x57   :  { %1437 = vmatpush.bf16.msra.mxu3 %v3380_v18  ;;  %v2920_v0 = vor.u32 %v3989_v59, %v2917_v61  ;;  %v3300_v18 = vor.u32 %v4087_v16, %v3299_v15  ;;  %v4021_v19 = vld [vmem:[#allocation4 + $0x124] sm:$0xf]  ;;  %v4083_v27 = vld [vmem:[#allocation4 + $0x30c] sm:$0xf0]  ;;  %v3237_v54 = vld [vmem:[#allocation4 + $0x2b0] sm:$0xf0] }
  0x58   :  { %1399 = vmatpush.bf16.msra.mxu0 %v2980_v26  ;;  %v2968_v26 = vor.u32 %v4001_v23, %v2965_v25  ;;  %v3253_v23 = vld [vmem:[#allocation4 + $0x2d0] sm:$0xf0]  ;;  %v4109_v33 = vld [vmem:[#allocation4 + $0x3e4] sm:$0xf] }
  0x59   :  { %1412 = vmatpush.bf16.msra.mxu1 %v3108_v29  ;;  %v4037_v29 = vld [vmem:[#allocation4 + $0x1a4] sm:$0xf]  ;;  %v3256_v25 = vor.u32 %v4073_v22, %v3253_v23  ;;  %v3205_v62 = vld [vmem:[#allocation4 + $0x270] sm:$0xf0] }
  0x5a   :  { %1425 = vmatpush.bf16.msra.mxu2 %v3236_v12  ;;  %v4077_v12 = vld [vmem:[#allocation4 + $0x2e4] sm:$0xf]  ;;  %v3349_v3 = vld [vmem:[#allocation4 + $0x390] sm:$0xf0] }
  0x5b   :  { %1438 = vmatpush.bf16.msra.mxu3 %v3364_v30  ;;  %v4061_v61 = vld [vmem:[#allocation4 + $0x264] sm:$0xf] }
  0x5c   :  { %1400 = vmatpush.bf16.msra.mxu0 %v2964_v32  ;;  %v3112_v32 = vor.u32 %v4037_v29, %v3109_v31  ;;  %v4017_v31 = vld [vmem:[#allocation4 + $0x104] sm:$0xf] }
  0x5d   :  { %1413 = vmatpush.bf16.msra.mxu1 %v3092_v35  ;;  %v3997_v35 = vld [vmem:[#allocation4 + $0x64] sm:$0xf] }
  0x5e   :  { %1426 = vmatpush.bf16.msra.mxu2 %v3220_v24  ;;  %v4057_v7 = vld [vmem:[#allocation4 + $0x244] sm:$0xf] }
  0x5f   :  { %1439 = vmatpush.bf16.msra.mxu3 %v3348_v40  ;;  %v4089_v23 = vld [vmem:[#allocation4 + $0x344] sm:$0xf] }
  0x60   :  { %1401 = vmatpush.bf16.msra.mxu0 %v2948_v37  ;;  %v2952_v37 = vor.u32 %v3997_v35, %v2949_v36  ;;  %v3397_v35 = vld [vmem:[#allocation4 + $0x3f0] sm:$0xf0] }
  0x61   :  { %1414 = vmatpush.bf16.msra.mxu1 %v3076_v39  ;;  %v4033_v39 = vld [vmem:[#allocation4 + $0x184] sm:$0xf]  ;;  %v3400_v36 = vor.u32 %v4109_v33, %v3397_v35 }
  0x62   :  { %1427 = vmatpush.bf16.msra.mxu2 %v3204_v50  ;;  %v3096_v44 = vor.u32 %v4033_v39, %v3093_v41  ;;  %v4105_v41 = vld [vmem:[#allocation4 + $0x3c4] sm:$0xf] }
  0x63   :  { %1440 = vmatpush.bf16.msra.mxu3 %v3332_v55  ;;  %v4085_v35 = vld [vmem:[#allocation4 + $0x324] sm:$0xf] }
  0x64   :  { %1402 = vmatpush.bf16.msra.mxu0 %v2932_v42  ;;  %v3187_v42 = vld [vmem:[#allocation4 + $0x240] sm:$0xf] }
  0x65   :  { %1415 = vmatpush.bf16.msra.mxu1 %v3060_v45  ;;  %v3188_v45 = vor.u32 %v4059_v43, %v3187_v42  ;;  %v3381_v42 = vld [vmem:[#allocation4 + $0x3d0] sm:$0xf0] }
  0x67   :  { %1428 = vmatpush.bf16.msra.mxu2 %v3188_v45  ;;  %1441 = vmatpush.bf16.msra.mxu3 %v3316_v4  ;;  %v3384_v45 = vor.u32 %v4105_v41, %v3381_v42 }
  0x68   :  { %1403 = vmatpush.bf16.msra.mxu0 %v2916_v46  ;;  %v3993_v46 = vld [vmem:[#allocation4 + $0x44] sm:$0xf] }
  0x69   :  { %1416 = vmatpush.bf16.msra.mxu1 %v3044_v57  ;;  %v2936_v49 = vor.u32 %v3993_v46, %v2933_v47  ;;  %v3171_v57 = vld [vmem:[#allocation4 + $0x220] sm:$0xf]  ;;  %v4065_v46 = vld [vmem:[#allocation4 + $0x284] sm:$0xf]  ;;  %v3221_v47 = vld [vmem:[#allocation4 + $0x290] sm:$0xf0] }
  0x6a   :  { %v3172_v60 = vor.u32 %v4055_v58, %v3171_v57  ;;  %v3365_v57 = vld [vmem:[#allocation4 + $0x3b0] sm:$0xf0] }
  0x6b   :  { %1442 = vmatpush.bf16.msra.mxu3 %v3300_v18  ;;  %v3173_v18 = vld [vmem:[#allocation4 + $0x230] sm:$0xf0] }
  0x6c   :  { %1404 = vmatpush.bf16.msra.mxu0 %v2900_v52  ;;  %v4029_v52 = vld [vmem:[#allocation4 + $0x164] sm:$0xf]  ;;  %1429 = vmatpush.bf16.msra.mxu2 %v3172_v60 }
  0x6d   :  { %1417 = vmatpush.bf16.msra.mxu1 %v3028_v2  ;;  %v3061_v2 = vld [vmem:[#allocation4 + $0x150] sm:$0xf0] }
  0x70   :  { %1449 = vmatpush.bf16.msrb.mxu0 %v3016_v53  ;;  %v3077_v53 = vld [vmem:[#allocation4 + $0x170] sm:$0xf0]  ;;  %1430 = vmatpush.bf16.msra.mxu2 %v3156_v9 }
  0x71   :  { %1462 = vmatpush.bf16.msrb.mxu1 %v3144_v8  ;;  %v3080_v56 = vor.u32 %v4029_v52, %v3077_v53  ;;  %v3224_v52 = vor.u32 %v4065_v46, %v3221_v47  ;;  %v4081_v46 = vld [vmem:[#allocation4 + $0x304] sm:$0xf] }
  0x74   :  { %1450 = vmatpush.bf16.msrb.mxu0 %v3000_v1  ;;  %v4025_v1 = vld [vmem:[#allocation4 + $0x144] sm:$0xf] }
  0x75   :  { %1463 = vmatpush.bf16.msrb.mxu1 %v3128_v20  ;;  %v3064_v8 = vor.u32 %v4025_v1, %v3061_v2  ;;  %v3045_v20 = vld [vmem:[#allocation4 + $0x130] sm:$0xf0]  ;;  %v4097_v2 = vld [vmem:[#allocation4 + $0x384] sm:$0xf] }
  0x76   :  { %v3048_v21 = vor.u32 %v4021_v19, %v3045_v20  ;;  %v3352_v5 = vor.u32 %v4097_v2, %v3349_v3 }
  0x78   :  { %1451 = vmatpush.bf16.msrb.mxu0 %v2984_v14  ;;  %v3272_v14 = vor.u32 %v4077_v12, %v3269_v13  ;;  %v4093_v13 = vld [vmem:[#allocation4 + $0x364] sm:$0xf] }
  0x79   :  { %1464 = vmatpush.bf16.msrb.mxu1 %v3112_v32  ;;  %v3029_v32 = vld [vmem:[#allocation4 + $0x110] sm:$0xf0] }
  0x7a   :  { %1475 = vmatpush.bf16.msrb.mxu2 %v3272_v14  ;;  %v3032_v34 = vor.u32 %v4017_v31, %v3029_v32  ;;  %v3333_v14 = vld [vmem:[#allocation4 + $0x370] sm:$0xf0] }
  0x7b   :  { %v3336_v16 = vor.u32 %v4093_v13, %v3333_v14  ;;  %v2955_v13 = vld [vmem:[#allocation4 + $0x68] sm:$0xf]  ;;  %v4000_v14 = vld [vmem:[#allocation4 + $0x74] sm:$0xf0] }
  0x7c   :  { %1452 = vmatpush.bf16.msrb.mxu0 %v2968_v26  ;;  %v3283_v26 = vld [vmem:[#allocation4 + $0x300] sm:$0xf] }
  0x7d   :  { %1465 = vmatpush.bf16.msrb.mxu1 %v3096_v44  ;;  %v3284_v30 = vor.u32 %v4083_v27, %v3283_v26  ;;  %v3019_v26 = vld [vmem:[#allocation4 + $0xe8] sm:$0xf]  ;;  %v4016_v27 = vld [vmem:[#allocation4 + $0xf4] sm:$0xf0] }
  0x7e   :  { %1476 = vmatpush.bf16.msrb.mxu2 %v3256_v25  ;;  %v3020_v33 = vor.u32 %v4016_v27, %v3019_v26 }
  0x7f   :  { %1443 = vmatpush.bf16.msra.mxu3 %v3284_v30  ;;  %v3157_v30 = vld [vmem:[#allocation4 + $0x210] sm:$0xf0] }
  0x80   :  { %1453 = vmatpush.bf16.msrb.mxu0 %v2952_v37  ;;  %v4069_v37 = vld [vmem:[#allocation4 + $0x2a4] sm:$0xf] }
  0x81   :  { %1466 = vmatpush.bf16.msrb.mxu1 %v3080_v56  ;;  %v3240_v39 = vor.u32 %v4069_v37, %v3237_v54  ;;  %v4101_v56 = vld [vmem:[#allocation4 + $0x3a4] sm:$0xf]  ;;  %v4012_v37 = vld [vmem:[#allocation4 + $0xd4] sm:$0xf0]  ;;  %v3301_v54 = vld [vmem:[#allocation4 + $0x330] sm:$0xf0] }
  0x82   :  { %v3368_v59 = vor.u32 %v4101_v56, %v3365_v57 }
  0x83   :  { %1488 = vmatpush.bf16.msrb.mxu3 %v3400_v36  ;;  %1477 = vmatpush.bf16.msrb.mxu2 %v3240_v39  ;;  %v3003_v36 = vld [vmem:[#allocation4 + $0xc8] sm:$0xf] }
  0x84   :  { %1454 = vmatpush.bf16.msrb.mxu0 %v2936_v49  ;;  %v3004_v42 = vor.u32 %v4012_v37, %v3003_v36  ;;  %v3067_v37 = vld [vmem:[#allocation4 + $0x148] sm:$0xf] }
  0x85   :  { %1467 = vmatpush.bf16.msrb.mxu1 %v3064_v8  ;;  %v3189_v8 = vld [vmem:[#allocation4 + $0x250] sm:$0xf0] }
  0x86   :  { %v3192_v12 = vor.u32 %v4057_v7, %v3189_v8  ;;  %v3115_v8 = vld [vmem:[#allocation4 + $0x1a8] sm:$0xf] }
  0x87   :  { %1489 = vmatpush.bf16.msrb.mxu3 %v3384_v45  ;;  %1478 = vmatpush.bf16.msrb.mxu2 %v3224_v52  ;;  %v4048_v45 = vld [vmem:[#allocation4 + $0x1f4] sm:$0xf0]  ;;  %v3285_v52 = vld [vmem:[#allocation4 + $0x310] sm:$0xf0] }
  0x88   :  { %1455 = vmatpush.bf16.msrb.mxu0 %v2920_v0  ;;  %v3208_v0 = vor.u32 %v4061_v61, %v3205_v62  ;;  %v3131_v61 = vld [vmem:[#allocation4 + $0x1c8] sm:$0xf]  ;;  %v4044_v62 = vld [vmem:[#allocation4 + $0x1d4] sm:$0xf0] }
  0x89   :  { %1468 = vmatpush.bf16.msrb.mxu1 %v3048_v21 }
  0x8b   :  { %1490 = vmatpush.bf16.msrb.mxu3 %v3368_v59  ;;  %1479 = vmatpush.bf16.msrb.mxu2 %v3208_v0  ;;  %v2971_v0 = vld [vmem:[#allocation4 + $0x88] sm:$0xf] }
  0x8c   :  { %1456 = vmatpush.bf16.msrb.mxu0 %v2904_v11 }
  0x8d   :  { %1469 = vmatpush.bf16.msrb.mxu1 %v3032_v34  ;;  %v142_v34 = vperm.slane %v4410_v10, 2 }
  0x8f   :  { %1491 = vmatpush.bf16.msrb.mxu3 %v3352_v5  ;;  %1480 = vmatpush.bf16.msrb.mxu2 %v3192_v12 }
  0x93   :  { %1492 = vmatpush.bf16.msrb.mxu3 %v3336_v16 }
  0xac   :  { %v484_v24 = vpop.f32.mrf.mxu0 }
  0xad   :  { %v485_v28 = vadd.f32 %v484_v24, %v140_v17  ;;  %v497_v29 = vpop.f32.mrf.mxu1  ;;  %v4053_v17 = vld [vmem:[#allocation4 + $0x224] sm:$0xf]  ;;  %v3317_v24 = vld [vmem:[#allocation4 + $0x350] sm:$0xf0] }
  0xae   :  { %v3176_v21 = vor.u32 %v4053_v17, %v3173_v18 }
  0xaf   :  { %v498_v50 = vadd.f32 %v497_v29, %v485_v28  ;;  %v3320_v28 = vor.u32 %v4089_v23, %v3317_v24  ;;  %v4049_v29 = vld [vmem:[#allocation4 + $0x204] sm:$0xf]  ;;  %v3996_v23 = vld [vmem:[#allocation4 + $0x54] sm:$0xf0] }
  0xb0   :  { %1481 = vmatpush.bf16.msrb.mxu2 %v3176_v21  ;;  %v3160_v32 = vor.u32 %v4049_v29, %v3157_v30  ;;  %v4036_v21 = vld [vmem:[#allocation4 + $0x194] sm:$0xf0] }
  0xb1   :  { %v583_v40 = vmul.f32 0.044715, %v498_v50  ;;  %v579_v19 = vmul.f32 0.5, %v498_v50  ;;  %1493 = vmatpush.bf16.msrb.mxu3 %v3320_v28 }
  0xb3   :  { %v587_v43 = vmul.f32 %v583_v40, %v498_v50  ;;  %v3147_v40 = vld [vmem:[#allocation4 + $0x1e8] sm:$0xf] }
  0xb4   :  { %v510_v44 = vpop.f32.mrf.mxu2  ;;  %v486_v51 = vpop.f32.mrf.mxu0  ;;  %1482 = vmatpush.bf16.msrb.mxu2 %v3160_v32  ;;  %v3148_v57 = vor.u32 %v4048_v45, %v3147_v40  ;;  %v4032_v32 = vld [vmem:[#allocation4 + $0x174] sm:$0xf0] }
  0xb5   :  { %v511_v48 = vadd.f32 %v510_v44, %v141_v38  ;;  %v523_v49 = vpop.f32.mrf.mxu3  ;;  %v591_v53 = vmul.f32 %v587_v43, %v498_v50  ;;  %v499_v55 = vpop.f32.mrf.mxu1  ;;  %v3304_v38 = vor.u32 %v4085_v35, %v3301_v54  ;;  %v4008_v51 = vld [vmem:[#allocation4 + $0xb4] sm:$0xf0] }
  0xb6   :  { %v3288_v55 = vor.u32 %v4081_v46, %v3285_v52 }
  0xb7   :  { %v4414_v58 = vadd.f32 %v523_v49, %v511_v48  ;;  %v595_v60 = vadd.f32 %v591_v53, %v498_v50  ;;  %1494 = vmatpush.bf16.msrb.mxu3 %v3304_v38  ;;  %v2987_v49 = vld [vmem:[#allocation4 + $0xa8] sm:$0xf]  ;;  %v4028_v38 = vld [vmem:[#allocation4 + $0x154] sm:$0xf0] }
  0xb9   :  { %v584_v63 = vmul.f32 0.044715, %v4414_v58  ;;  %v599_v1 = vmul.f32 0.7978846, %v595_v60  ;;  %v580_v43 = vmul.f32 0.5, %v4414_v58  ;;  %v143_v60 = vperm.slane %v4410_v10, 3 }
  0xbb   :  { %v588_v4 = vmul.f32 %v584_v63, %v4414_v58  ;;  %4246 = vtanh.f32 %v599_v1  ;;  %1495 = vmatpush.bf16.msrb.mxu3 %v3288_v55  ;;  %v4004_v1 = vld [vmem:[#allocation4 + $0x94] sm:$0xf0] }
  0xbc   :  { %v512_v6 = vpop.f32.mrf.mxu2  ;;  %v2972_v10 = vor.u32 %v4004_v1, %v2971_v0  ;;  %v4024_v55 = vld [vmem:[#allocation4 + $0x134] sm:$0xf0]  ;;  %v3005_v0 = vld [vmem:[#allocation4 + $0xd8] sm:$0xf0]  ;;  %v3035_v1 = vld [vmem:[#allocation4 + $0x108] sm:$0xf] }
  0xbd   :  { %v592_v9 = vmul.f32 %v588_v4, %v4414_v58  ;;  %v525_v11 = vpop.f32.mrf.mxu3  ;;  %v3132_v4 = vor.u32 %v4044_v62, %v3131_v61  ;;  %v4076_v62 = vld [vmem:[#allocation4 + $0x2d4] sm:$0xf0] }
  0xbf   :  { %v596_v15 = vadd.f32 %v592_v9, %v4414_v58  ;;  %v2988_v58 = vor.u32 %v4008_v51, %v2987_v49  ;;  %v4040_v9 = vld [vmem:[#allocation4 + $0x1b4] sm:$0xf0]  ;;  %v3068_v49 = vor.u32 %v4028_v38, %v3067_v37  ;;  %v4038_v37 = vld [vmem:[#allocation4 + $0x1ac] sm:$0xf] }
  0xc0   :  { %v3116_v16 = vor.u32 %v4040_v9, %v3115_v8  ;;  %v3998_v38 = vld [vmem:[#allocation4 + $0x6c] sm:$0xf] }
  0xc1   :  { %v600_v20 = vmul.f32 0.7978846, %v596_v15  ;;  %v4247_v22 = vpop.eup %4246 }
  0xc2   :  { %v607_v25 = vadd.f32 1.0, %v4247_v22  ;;  %v2939_v22 = vld [vmem:[#allocation4 + $0x48] sm:$0xf] }
  0xc3   :  { %4248 = vtanh.f32 %v600_v20  ;;  %v3099_v20 = vld [vmem:[#allocation4 + $0x188] sm:$0xf]  ;;  %v2940_v30 = vor.u32 %v3996_v23, %v2939_v22  ;;  %v4108_v22 = vld [vmem:[#allocation4 + $0x3d4] sm:$0xf0] }
  0xc4   :  { %v611_v31 = vmul.f32 %v607_v25, %v579_v19  ;;  %v2956_v19 = vor.u32 %v4000_v14, %v2955_v13  ;;  %v3100_v27 = vor.u32 %v4036_v21, %v3099_v20  ;;  %v4072_v13 = vld [vmem:[#allocation4 + $0x2b4] sm:$0xf0]  ;;  %v4006_v14 = vld [vmem:[#allocation4 + $0xac] sm:$0xf]  ;;  %v3387_v21 = vld [vmem:[#allocation4 + $0x3c8] sm:$0xf] }
  0xc6   :  { %v4421_v50 = vpack.c.bf16 %v611_v31, %v611_v31  ;;  %v3083_v31 = vld [vmem:[#allocation4 + $0x168] sm:$0xf] }
  0xc7   :  { %v3084_v36 = vor.u32 %v4032_v32, %v3083_v31  ;;  %v3388_v31 = vor.u32 %v4108_v22, %v3387_v21  ;;  %v4078_v21 = vld [vmem:[#allocation4 + $0x2ec] sm:$0xf]  ;;  %v3277_v22 = vld [vmem:[#allocation4 + $0x2f8] sm:$0xf0] }
  0xc8   :  { %1405 = vmatmul.bf16.vlgmr.msra.gmra.mxu0 %v4421_v50 }
  0xc9   :  { %v4249_v39 = vpop.eup %4248  ;;  %1501 = vmatpush.bf16.msra.mxu0 %v3020_v33  ;;  %v2923_v33 = vld [vmem:[#allocation4 + $0x28] sm:$0xf] }
  0xca   :  { %v608_v44 = vadd.f32 1.0, %v4249_v39  ;;  %v2907_v39 = vld [vmem:[#allocation4 + $0x8] sm:$0xf] }
  0xcc   :  { %v536_v41 = vpop.f32.mrf.mxu0  ;;  %v612_v53 = vmul.f32 %v608_v44, %v580_v43  ;;  %v3275_v43 = vld [vmem:[#allocation4 + $0x2e8] sm:$0xf]  ;;  %v4080_v44 = vld [vmem:[#allocation4 + $0x2f4] sm:$0xf0] }
  0xcd   :  { %v537_v47 = vadd.f32 %v536_v41, %v142_v34  ;;  %v549_v48 = vpop.f32.mrf.mxu1  ;;  %1502 = vmatpush.bf16.msra.mxu0 %v3004_v42  ;;  %v3992_v34 = vld [vmem:[#allocation4 + $0x34] sm:$0xf0] }
  0xce   :  { %v4427_v59 = vpack.c.bf16 %v612_v53, %v612_v53  ;;  %v2924_v54 = vor.u32 %v3992_v34, %v2923_v33  ;;  %v3988_v42 = vld [vmem:[#allocation4 + $0x14] sm:$0xf0]  ;;  %v3051_v53 = vld [vmem:[#allocation4 + $0x128] sm:$0xf] }
  0xcf   :  { %v4425_v56 = vadd.f32 %v549_v48, %v537_v47  ;;  %v4014_v47 = vld [vmem:[#allocation4 + $0xec] sm:$0xf]  ;;  %v3021_v48 = vld [vmem:[#allocation4 + $0xf8] sm:$0xf0]  ;;  %v2908_v51 = vor.u32 %v3988_v42, %v2907_v39  ;;  %v3371_v33 = vld [vmem:[#allocation4 + $0x3a8] sm:$0xf] }
  0xd0   :  { %1418 = vmatmul.bf16.vlgmr.msra.gmra.mxu1 %v4427_v59  ;;  %v2957_v39 = vld [vmem:[#allocation4 + $0x78] sm:$0xf0] }
  0xd1   :  { %v585_v63 = vmul.f32 0.044715, %v4425_v56  ;;  %1514 = vmatpush.bf16.msra.mxu1 %v3148_v57  ;;  %1503 = vmatpush.bf16.msra.mxu0 %v2988_v58  ;;  %v581_v45 = vmul.f32 0.5, %v4425_v56  ;;  %v3276_v57 = vor.u32 %v4080_v44, %v3275_v43  ;;  %v3259_v58 = vld [vmem:[#allocation4 + $0x2c8] sm:$0xf] }
  0xd2   :  { %v3355_v44 = vld [vmem:[#allocation4 + $0x388] sm:$0xf] }
  0xd3   :  { %v589_v2 = vmul.f32 %v585_v63, %v4425_v56  ;;  %v4010_v63 = vld [vmem:[#allocation4 + $0xcc] sm:$0xf] }
  0xd4   :  { %v562_v3 = vpop.f32.mrf.mxu2  ;;  %v538_v7 = vpop.f32.mrf.mxu0 }
  0xd5   :  { %v563_v5 = vadd.f32 %v562_v3, %v143_v60  ;;  %v575_v6 = vpop.f32.mrf.mxu3  ;;  %v593_v11 = vmul.f32 %v589_v2, %v4425_v56  ;;  %v551_v12 = vpop.f32.mrf.mxu1  ;;  %1515 = vmatpush.bf16.msra.mxu1 %v3132_v4  ;;  %1504 = vmatpush.bf16.msra.mxu0 %v2972_v10  ;;  %v3024_v60 = vor.u32 %v4014_v47, %v3021_v48  ;;  %v4020_v2 = vld [vmem:[#allocation4 + $0x114] sm:$0xf0]  ;;  %v3403_v4 = vld [vmem:[#allocation4 + $0x3e8] sm:$0xf]  ;;  %v4034_v47 = vld [vmem:[#allocation4 + $0x18c] sm:$0xf] }
  0xd6   :  { %v3260_v7 = vor.u32 %v4076_v62, %v3259_v58  ;;  %v3008_v10 = vor.u32 %v4010_v63, %v3005_v0  ;;  %v3243_v12 = vld [vmem:[#allocation4 + $0x2a8] sm:$0xf]  ;;  %v3101_v48 = vld [vmem:[#allocation4 + $0x198] sm:$0xf0]  ;;  %v4096_v63 = vld [vmem:[#allocation4 + $0x374] sm:$0xf0] }
  0xd7   :  { %v4434_v15 = vadd.f32 %v575_v6, %v563_v5  ;;  %v597_v17 = vadd.f32 %v593_v11, %v4425_v56  ;;  %v3052_v56 = vor.u32 %v4024_v55, %v3051_v53  ;;  %v4112_v5 = vld [vmem:[#allocation4 + $0x3f4] sm:$0xf0]  ;;  %v4046_v6 = vld [vmem:[#allocation4 + $0x1ec] sm:$0xf]  ;;  %v3149_v11 = vld [vmem:[#allocation4 + $0x1f8] sm:$0xf0] }
  0xd8   :  { %1457 = vmatmul.bf16.vlgmr.msrb.gmra.mxu0 %v4421_v50  ;;  %v3152_v20 = vor.u32 %v4046_v6, %v3149_v11  ;;  %v3195_v53 = vld [vmem:[#allocation4 + $0x248] sm:$0xf]  ;;  %v4060_v55 = vld [vmem:[#allocation4 + $0x254] sm:$0xf0]  ;;  %v4030_v0 = vld [vmem:[#allocation4 + $0x16c] sm:$0xf] }
  0xd9   :  { %v586_v18 = vmul.f32 0.044715, %v4434_v15  ;;  %v601_v24 = vmul.f32 0.7978846, %v597_v17  ;;  %1516 = vmatpush.bf16.msra.mxu1 %v3116_v16  ;;  %1505 = vmatpush.bf16.msra.mxu0 %v2956_v19  ;;  %v582_v8 = vmul.f32 0.5, %v4434_v15  ;;  %v3036_v17 = vor.u32 %v4020_v2, %v3035_v1 }
  0xda   :  { %v2989_v16 = vld [vmem:[#allocation4 + $0xb8] sm:$0xf0]  ;;  %v3404_v19 = vor.u32 %v4112_v5, %v3403_v4  ;;  %v3339_v58 = vld [vmem:[#allocation4 + $0x368] sm:$0xf]  ;;  %v3196_v1 = vor.u32 %v4060_v55, %v3195_v53  ;;  %v3990_v2 = vld [vmem:[#allocation4 + $0x2c] sm:$0xf] }
  0xdb   :  { %v590_v25 = vmul.f32 %v586_v18, %v4434_v15  ;;  %4250 = vtanh.f32 %v601_v24  ;;  %v2992_v24 = vor.u32 %v4006_v14, %v2989_v16  ;;  %v3179_v4 = vld [vmem:[#allocation4 + $0x228] sm:$0xf]  ;;  %v4056_v5 = vld [vmem:[#allocation4 + $0x234] sm:$0xf0]  ;;  %v3340_v6 = vor.u32 %v4096_v63, %v3339_v58  ;;  %v4026_v11 = vld [vmem:[#allocation4 + $0x14c] sm:$0xf] }
  0xdc   :  { %v564_v26 = vpop.f32.mrf.mxu2  ;;  %v3986_v14 = vld [vmem:[#allocation4 + $0xc] sm:$0xf]  ;;  %v2909_v16 = vld [vmem:[#allocation4 + $0x18] sm:$0xf0] }
  0xdd   :  { %v594_v28 = vmul.f32 %v590_v25, %v4434_v15  ;;  %v577_v29 = vpop.f32.mrf.mxu3  ;;  %1517 = vmatpush.bf16.msra.mxu1 %v3100_v27  ;;  %1506 = vmatpush.bf16.msra.mxu0 %v2940_v30  ;;  %v4042_v25 = vld [vmem:[#allocation4 + $0x1cc] sm:$0xf]  ;;  %v3133_v26 = vld [vmem:[#allocation4 + $0x1d8] sm:$0xf0]  ;;  %v3227_v27 = vld [vmem:[#allocation4 + $0x288] sm:$0xf] }
  0xde   :  { %v4002_v29 = vld [vmem:[#allocation4 + $0x8c] sm:$0xf]  ;;  %v2973_v30 = vld [vmem:[#allocation4 + $0x98] sm:$0xf0]  ;;  %v3136_v32 = vor.u32 %v4042_v25, %v3133_v26  ;;  %v4088_v25 = vld [vmem:[#allocation4 + $0x334] sm:$0xf0] }
  0xdf   :  { %v598_v35 = vadd.f32 %v594_v28, %v4434_v15  ;;  %v3244_v15 = vor.u32 %v4072_v13, %v3243_v12  ;;  %v4068_v28 = vld [vmem:[#allocation4 + $0x294] sm:$0xf0]  ;;  %v3069_v12 = vld [vmem:[#allocation4 + $0x158] sm:$0xf0]  ;;  %v3180_v13 = vor.u32 %v4056_v5, %v3179_v4  ;;  %v4022_v26 = vld [vmem:[#allocation4 + $0x12c] sm:$0xf] }
  0xe0   :  { %1470 = vmatmul.bf16.vlgmr.msrb.gmra.mxu1 %v4427_v59  ;;  %v3228_v34 = vor.u32 %v4068_v28, %v3227_v27  ;;  %v3053_v27 = vld [vmem:[#allocation4 + $0x138] sm:$0xf0]  ;;  %v4098_v58 = vld [vmem:[#allocation4 + $0x38c] sm:$0xf] }
  0xe1   :  { %v602_v40 = vmul.f32 0.7978846, %v598_v35  ;;  %v4251_v41 = vpop.eup %4250  ;;  %1518 = vmatpush.bf16.msra.mxu1 %v3084_v36  ;;  %1507 = vmatpush.bf16.msra.mxu0 %v2924_v54  ;;  %v2976_v35 = vor.u32 %v4002_v29, %v2973_v30  ;;  %v4104_v36 = vld [vmem:[#allocation4 + $0x3b4] sm:$0xf0]  ;;  %v3117_v54 = vld [vmem:[#allocation4 + $0x1b8] sm:$0xf0]  ;;  %v3280_v29 = vor.u32 %v4078_v21, %v3277_v22 }
  0xe2   :  { %v609_v46 = vadd.f32 1.0, %v4251_v41  ;;  %v4064_v41 = vld [vmem:[#allocation4 + $0x274] sm:$0xf0]  ;;  %v3372_v42 = vor.u32 %v4104_v36, %v3371_v33  ;;  %v3120_v43 = vor.u32 %v4038_v37, %v3117_v54  ;;  %v3261_v33 = vld [vmem:[#allocation4 + $0x2d8] sm:$0xf0] }
  0xe3   :  { %4252 = vtanh.f32 %v602_v40  ;;  %v3211_v40 = vld [vmem:[#allocation4 + $0x268] sm:$0xf]  ;;  %v4018_v36 = vld [vmem:[#allocation4 + $0x10c] sm:$0xf]  ;;  %v3037_v37 = vld [vmem:[#allocation4 + $0x118] sm:$0xf0] }
  0xe4   :  { %v613_v52 = vmul.f32 %v609_v46, %v581_v45  ;;  %v2960_v45 = vor.u32 %v3998_v38, %v2957_v39  ;;  %v4100_v46 = vld [vmem:[#allocation4 + $0x394] sm:$0xf0]  ;;  %v4110_v54 = vld [vmem:[#allocation4 + $0x3ec] sm:$0xf]  ;;  %v3405_v38 = vld [vmem:[#allocation4 + $0x3f8] sm:$0xf0] }
  0xe5   :  { %1519 = vmatpush.bf16.msra.mxu1 %v3068_v49  ;;  %1508 = vmatpush.bf16.msra.mxu0 %v2908_v51  ;;  %v3212_v49 = vor.u32 %v4064_v41, %v3211_v40  ;;  %v3994_v51 = vld [vmem:[#allocation4 + $0x4c] sm:$0xf]  ;;  %v3040_v41 = vor.u32 %v4018_v36, %v3037_v37  ;;  %v3373_v53 = vld [vmem:[#allocation4 + $0x3b8] sm:$0xf0]  ;;  %v3523_v21 = vld [vmem:[#allocation6 + $0xe0] sm:$0xf] }
  0xe6   :  { %v4444_v61 = vpack.c.bf16 %v613_v52, %v613_v52  ;;  %v2941_v52 = vld [vmem:[#allocation4 + $0x58] sm:$0xf0]  ;;  %v4054_v4 = vld [vmem:[#allocation4 + $0x22c] sm:$0xf]  ;;  %v4143_v22 = vld [vmem:[#allocation6 + $0xec] sm:$0xf0] }
  0xe7   :  { %v2944_v62 = vor.u32 %v3994_v51, %v2941_v52  ;;  %v4102_v52 = vld [vmem:[#allocation4 + $0x3ac] sm:$0xf]  ;;  %v3181_v5 = vld [vmem:[#allocation4 + $0x238] sm:$0xf0]  ;;  %v3443_v36 = vld [vmem:[#allocation6 + $0x40] sm:$0xf] }
  0xe8   :  { %1431 = vmatmul.bf16.vlgmr.msra.gmra.mxu2 %v4444_v61  ;;  %1509 = vmatmul.bf16.vlgmr.msra.gmra.mxu0 %v4421_v50  ;;  %v4123_v37 = vld [vmem:[#allocation6 + $0x4c] sm:$0xf0] }
  0xe9   :  { %v4253_v3 = vpop.eup %4252  ;;  %1527 = vmatpush.bf16.msra.mxu2 %v3276_v57  ;;  %1553 = vmatpush.bf16.msrb.mxu0 %v3024_v60  ;;  %v3356_v57 = vor.u32 %v4100_v46, %v3355_v44  ;;  %v3104_v60 = vor.u32 %v4034_v47, %v3101_v48  ;;  %v3408_v44 = vor.u32 %v4110_v54, %v3405_v38  ;;  %v3389_v46 = vld [vmem:[#allocation4 + $0x3d8] sm:$0xf0]  ;;  %v4066_v48 = vld [vmem:[#allocation4 + $0x28c] sm:$0xf]  ;;  %v3635_v38 = vld [vmem:[#allocation6 + $0x1c0] sm:$0xf] }
  0xea   :  { %v610_v9 = vadd.f32 1.0, %v4253_v3  ;;  %1520 = vmatpush.bf16.msra.mxu1 %v3052_v56  ;;  %v3085_v56 = vld [vmem:[#allocation4 + $0x178] sm:$0xf0] }
  0xeb   :  { %v2925_v3 = vld [vmem:[#allocation4 + $0x38] sm:$0xf0] }
  0xec   :  { %v614_v18 = vmul.f32 %v610_v9, %v582_v8  ;;  %v2928_v8 = vor.u32 %v3990_v2, %v2925_v3  ;;  %v4092_v9 = vld [vmem:[#allocation4 + $0x354] sm:$0xf0]  ;;  %v4094_v2 = vld [vmem:[#allocation4 + $0x36c] sm:$0xf]  ;;  %v3341_v3 = vld [vmem:[#allocation4 + $0x378] sm:$0xf0] }
  0xed   :  { %1528 = vmatpush.bf16.msra.mxu2 %v3260_v7  ;;  %1554 = vmatpush.bf16.msrb.mxu0 %v3008_v10  ;;  %v3088_v7 = vor.u32 %v4030_v0, %v3085_v56  ;;  %v3323_v10 = vld [vmem:[#allocation4 + $0x348] sm:$0xf]  ;;  %v4058_v0 = vld [vmem:[#allocation4 + $0x24c] sm:$0xf]  ;;  %v3197_v56 = vld [vmem:[#allocation4 + $0x258] sm:$0xf0] }
  0xee   :  { %v4449_v23 = vpack.c.bf16 %v614_v18, %v614_v18  ;;  %1521 = vmatpush.bf16.msra.mxu1 %v3036_v17  ;;  %v3163_v17 = vld [vmem:[#allocation4 + $0x208] sm:$0xf]  ;;  %v4052_v18 = vld [vmem:[#allocation4 + $0x214] sm:$0xf0] }
  0xef   :  { %v3164_v28 = vor.u32 %v4052_v18, %v3163_v17  ;;  %v4082_v18 = vld [vmem:[#allocation4 + $0x30c] sm:$0xf] }
  0xf0   :  { %1444 = vmatmul.bf16.vlgmr.msra.gmra.mxu3 %v4449_v23 }
  0xf1   :  { %1540 = vmatpush.bf16.msra.mxu3 %v3404_v19  ;;  %1529 = vmatpush.bf16.msra.mxu2 %v3244_v15  ;;  %v3324_v19 = vor.u32 %v4092_v9, %v3323_v10  ;;  %v3307_v15 = vld [vmem:[#allocation4 + $0x328] sm:$0xf]  ;;  %v3325_v10 = vld [vmem:[#allocation4 + $0x358] sm:$0xf0]  ;;  %v4050_v9 = vld [vmem:[#allocation4 + $0x20c] sm:$0xf] }
  0xf2   :  { %1566 = vmatpush.bf16.msrb.mxu1 %v3152_v20  ;;  %1555 = vmatpush.bf16.msrb.mxu0 %v2992_v24  ;;  %v3072_v20 = vor.u32 %v4026_v11, %v3069_v12  ;;  %v2912_v24 = vor.u32 %v3986_v14, %v2909_v16  ;;  %v3308_v30 = vor.u32 %v4088_v25, %v3307_v15  ;;  %v3165_v11 = vld [vmem:[#allocation4 + $0x218] sm:$0xf0]  ;;  %v3507_v15 = vld [vmem:[#allocation6 + $0xc0] sm:$0xf]  ;;  %v4139_v25 = vld [vmem:[#allocation6 + $0xcc] sm:$0xf0] }
  0xf3   :  { %1522 = vmatmul.bf16.vlgmr.msra.gmra.mxu1 %v4427_v59  ;;  %v3309_v14 = vld [vmem:[#allocation4 + $0x338] sm:$0xf0]  ;;  %v3168_v16 = vor.u32 %v4050_v9, %v3165_v11  ;;  %v4203_v11 = vld [vmem:[#allocation6 + $0x2cc] sm:$0xf0] }
  0xf5   :  { %1541 = vmatpush.bf16.msra.mxu3 %v3388_v31  ;;  %1530 = vmatpush.bf16.msra.mxu2 %v3228_v34  ;;  %v3056_v31 = vor.u32 %v4022_v26, %v3053_v27  ;;  %v3291_v34 = vld [vmem:[#allocation4 + $0x308] sm:$0xf]  ;;  %v3508_v26 = vor.u32 %v4139_v25, %v3507_v15  ;;  %v3491_v27 = vld [vmem:[#allocation6 + $0xa0] sm:$0xf]  ;;  %v4199_v15 = vld [vmem:[#allocation6 + $0x2ac] sm:$0xf0] }
  0xf6   :  { %1567 = vmatpush.bf16.msrb.mxu1 %v3136_v32  ;;  %1556 = vmatpush.bf16.msrb.mxu0 %v2976_v35  ;;  %v4074_v32 = vld [vmem:[#allocation4 + $0x2cc] sm:$0xf]  ;;  %v4084_v35 = vld [vmem:[#allocation4 + $0x314] sm:$0xf0]  ;;  %v3477_v25 = vld [vmem:[#allocation6 + $0x90] sm:$0xf0] }
  0xf7   :  { %v3264_v39 = vor.u32 %v4074_v32, %v3261_v33  ;;  %v3292_v40 = vor.u32 %v4084_v35, %v3291_v34  ;;  %v4127_v33 = vld [vmem:[#allocation6 + $0x6c] sm:$0xf0]  ;;  %v3651_v34 = vld [vmem:[#allocation6 + $0x1e0] sm:$0xf] }
  0xf8   :  { %1483 = vmatmul.bf16.vlgmr.msrb.gmra.mxu2 %v4444_v61  ;;  %v4175_v35 = vld [vmem:[#allocation6 + $0x1ec] sm:$0xf0] }
  0xf9   :  { %1542 = vmatpush.bf16.msra.mxu3 %v3372_v42  ;;  %1531 = vmatpush.bf16.msra.mxu2 %v3212_v49  ;;  %v4070_v42 = vld [vmem:[#allocation4 + $0x2ac] sm:$0xf]  ;;  %v3229_v49 = vld [vmem:[#allocation4 + $0x298] sm:$0xf0]  ;;  %v3652_v54 = vor.u32 %v4175_v35, %v3651_v34  ;;  %v4173_v35 = vld [vmem:[#allocation6 + $0x1e4] sm:$0xf] }
  0xfa   :  { %1568 = vmatpush.bf16.msrb.mxu1 %v3120_v43  ;;  %1557 = vmatpush.bf16.msrb.mxu0 %v2960_v45  ;;  %v3245_v43 = vld [vmem:[#allocation4 + $0x2b8] sm:$0xf0]  ;;  %v4106_v45 = vld [vmem:[#allocation4 + $0x3cc] sm:$0xf]  ;;  %v3232_v55 = vor.u32 %v4066_v48, %v3229_v49  ;;  %v3411_v49 = vld [vmem:[#allocation6] sm:$0xf] }
  0xfb   :  { %v3248_v47 = vor.u32 %v4070_v42, %v3245_v43  ;;  %v3392_v51 = vor.u32 %v4106_v45, %v3389_v46  ;;  %v3427_v43 = vld [vmem:[#allocation6 + $0x20] sm:$0xf] }
  0xfc   :  { %v3619_v45 = vld [vmem:[#allocation6 + $0x1a0] sm:$0xf] }
  0xfd   :  { %1543 = vmatpush.bf16.msra.mxu3 %v3356_v57  ;;  %1532 = vmatpush.bf16.msra.mxu2 %v3196_v1  ;;  %v3213_v57 = vld [vmem:[#allocation4 + $0x278] sm:$0xf0] }
  0xfe   :  { %1569 = vmatpush.bf16.msrb.mxu1 %v3104_v60  ;;  %1558 = vmatpush.bf16.msrb.mxu0 %v2944_v62  ;;  %v3376_v60 = vor.u32 %v4102_v52, %v3373_v53  ;;  %v3357_v62 = vld [vmem:[#allocation4 + $0x398] sm:$0xf0]  ;;  %v3603_v52 = vld [vmem:[#allocation6 + $0x180] sm:$0xf] }
  0xff   :  { %v3360_v1 = vor.u32 %v4098_v58, %v3357_v62 }
 0x100   :  { %1496 = vmatmul.bf16.vlgmr.msrb.gmra.mxu3 %v4449_v23 }
 0x101   :  { %1544 = vmatpush.bf16.msra.mxu3 %v3340_v6  ;;  %1533 = vmatpush.bf16.msra.mxu2 %v3180_v13  ;;  %v3344_v6 = vor.u32 %v4094_v2, %v3341_v3  ;;  %v4086_v13 = vld [vmem:[#allocation4 + $0x32c] sm:$0xf]  ;;  %v4207_v3 = vld [vmem:[#allocation6 + $0x2ec] sm:$0xf0] }
 0x102   :  { %1570 = vmatpush.bf16.msrb.mxu1 %v3088_v7  ;;  %1559 = vmatpush.bf16.msrb.mxu0 %v2928_v8  ;;  %v4090_v7 = vld [vmem:[#allocation4 + $0x34c] sm:$0xf]  ;;  %v3184_v8 = vor.u32 %v4054_v4, %v3181_v5  ;;  %v3312_v17 = vor.u32 %v4086_v13, %v3309_v14  ;;  %v3509_v4 = vld [vmem:[#allocation6 + $0xd0] sm:$0xf0] }
 0x103   :  { %v3328_v12 = vor.u32 %v4090_v7, %v3325_v10  ;;  %v3571_v7 = vld [vmem:[#allocation6 + $0x140] sm:$0xf]  ;;  %v4155_v10 = vld [vmem:[#allocation6 + $0x14c] sm:$0xf0]  ;;  %v3493_v13 = vld [vmem:[#allocation6 + $0xb0] sm:$0xf0] }
 0x104   :  { %v3572_v9 = vor.u32 %v4155_v10, %v3571_v7  ;;  %v3605_v10 = vld [vmem:[#allocation6 + $0x190] sm:$0xf0] }
 0x105   :  { %1545 = vmatpush.bf16.msra.mxu3 %v3324_v19  ;;  %1534 = vmatpush.bf16.msra.mxu2 %v3164_v28  ;;  %v3293_v19 = vld [vmem:[#allocation4 + $0x318] sm:$0xf0]  ;;  %v4135_v28 = vld [vmem:[#allocation6 + $0xac] sm:$0xf0] }
 0x106   :  { %1571 = vmatpush.bf16.msrb.mxu1 %v3072_v20  ;;  %1560 = vmatpush.bf16.msrb.mxu0 %v2912_v24  ;;  %v3296_v20 = vor.u32 %v4082_v18, %v3293_v19  ;;  %v3524_v24 = vor.u32 %v4143_v22, %v3523_v21  ;;  %v3555_v19 = vld [vmem:[#allocation6 + $0x120] sm:$0xf] }
 0x107   :  { %v3747_v21 = vld [vmem:[#allocation6 + $0x2a0] sm:$0xf] }
 0x108   :  { %1535 = vmatmul.bf16.vlgmr.msra.gmra.mxu2 %v4444_v61 }
 0x109   :  { %1579 = vmatpush.bf16.msrb.mxu2 %v3280_v29  ;;  %1546 = vmatpush.bf16.msra.mxu3 %v3308_v30  ;;  %v3492_v29 = vor.u32 %v4135_v28, %v3491_v27  ;;  %v3475_v30 = vld [vmem:[#allocation6 + $0x80] sm:$0xf] }
 0x10a   :  { %1572 = vmatpush.bf16.msrb.mxu1 %v3056_v31  ;;  %1561 = vmatmul.bf16.vlgmr.msrb.gmra.mxu0 %v4421_v50  ;;  %v4062_v50 = vld [vmem:[#allocation4 + $0x26c] sm:$0xf]  ;;  %v4131_v31 = vld [vmem:[#allocation6 + $0x8c] sm:$0xf0]  ;;  %v3539_v28 = vld [vmem:[#allocation6 + $0x100] sm:$0xf] }
 0x10b   :  { %v3216_v63 = vor.u32 %v4062_v50, %v3213_v57  ;;  %2423 = vmatpush.bf16.msra.mxu0 %v3524_v24  ;;  %v3476_v32 = vor.u32 %v4131_v31, %v3475_v30  ;;  %v4141_v50 = vld [vmem:[#allocation6 + $0xe4] sm:$0xf]  ;;  %v3525_v57 = vld [vmem:[#allocation6 + $0xf0] sm:$0xf0]  ;;  %v3731_v30 = vld [vmem:[#allocation6 + $0x280] sm:$0xf] }
 0x10c   :  { %v3528_v58 = vor.u32 %v4141_v50, %v3525_v57  ;;  %v4129_v24 = vld [vmem:[#allocation6 + $0x84] sm:$0xf]  ;;  %v3429_v50 = vld [vmem:[#allocation6 + $0x30] sm:$0xf0] }
 0x10d   :  { %1580 = vmatpush.bf16.msrb.mxu2 %v3264_v39  ;;  %1547 = vmatpush.bf16.msra.mxu3 %v3292_v40  ;;  %v4171_v39 = vld [vmem:[#allocation6 + $0x1cc] sm:$0xf0]  ;;  %v3444_v40 = vor.u32 %v4123_v37, %v3443_v36  ;;  %v3480_v27 = vor.u32 %v4129_v24, %v3477_v25  ;;  %v3653_v36 = vld [vmem:[#allocation6 + $0x1f0] sm:$0xf0] }
 0x10e   :  { %1573 = vmatpush.bf16.msrb.mxu1 %v3040_v41  ;;  %v3636_v41 = vor.u32 %v4171_v39, %v3635_v38  ;;  %v3715_v39 = vld [vmem:[#allocation6 + $0x260] sm:$0xf]  ;;  %v3781_v24 = vld [vmem:[#allocation6 + $0x2f0] sm:$0xf0] }
 0x10f   :  { %2424 = vmatpush.bf16.msra.mxu0 %v3508_v26  ;;  %v3748_v26 = vor.u32 %v4199_v15, %v3747_v21  ;;  %v4205_v15 = vld [vmem:[#allocation6 + $0x2e4] sm:$0xf] }
 0x110   :  { %1548 = vmatmul.bf16.vlgmr.msra.gmra.mxu3 %v4449_v23 }
 0x111   :  { %1592 = vmatpush.bf16.msrb.mxu3 %v3408_v44  ;;  %1574 = vmatmul.bf16.vlgmr.msrb.gmra.mxu1 %v4427_v59  ;;  %v3200_v59 = vor.u32 %v4058_v0, %v3197_v56  ;;  %v4119_v44 = vld [vmem:[#allocation6 + $0x2c] sm:$0xf0]  ;;  %v3587_v0 = vld [vmem:[#allocation6 + $0x160] sm:$0xf] }
 0x112   :  { %1581 = vmatpush.bf16.msrb.mxu2 %v3248_v47  ;;  %2436 = vmatpush.bf16.msra.mxu1 %v3652_v54  ;;  %v3428_v46 = vor.u32 %v4119_v44, %v3427_v43  ;;  %v4167_v47 = vld [vmem:[#allocation6 + $0x1ac] sm:$0xf0]  ;;  %v3656_v54 = vor.u32 %v4173_v35, %v3653_v36  ;;  %v4121_v43 = vld [vmem:[#allocation6 + $0x44] sm:$0xf]  ;;  %v3445_v44 = vld [vmem:[#allocation6 + $0x50] sm:$0xf0] }
 0x113   :  { %2425 = vmatpush.bf16.msra.mxu0 %v3492_v29  ;;  %v3620_v48 = vor.u32 %v4167_v47, %v3619_v45  ;;  %v4159_v56 = vld [vmem:[#allocation6 + $0x16c] sm:$0xf0]  ;;  %v4169_v45 = vld [vmem:[#allocation6 + $0x1c4] sm:$0xf]  ;;  %v3637_v47 = vld [vmem:[#allocation6 + $0x1d0] sm:$0xf0] }
 0x114   :  { %v3588_v2 = vor.u32 %v4159_v56, %v3587_v0  ;;  %v4147_v29 = vld [vmem:[#allocation6 + $0x10c] sm:$0xf0]  ;;  %v3765_v35 = vld [vmem:[#allocation6 + $0x2d0] sm:$0xf0] }
 0x115   :  { %1593 = vmatpush.bf16.msrb.mxu3 %v3392_v51  ;;  %v4115_v51 = vld [vmem:[#allocation6 + $0xc] sm:$0xf0]  ;;  %v3540_v31 = vor.u32 %v4147_v29, %v3539_v28  ;;  %v3891_v29 = vld [vmem:[#allocation6 + $0x3c0] sm:$0xf] }
 0x116   :  { %1582 = vmatpush.bf16.msrb.mxu2 %v3232_v55  ;;  %2437 = vmatpush.bf16.msra.mxu1 %v3636_v41  ;;  %v3412_v53 = vor.u32 %v4115_v51, %v3411_v49  ;;  %v4163_v55 = vld [vmem:[#allocation6 + $0x18c] sm:$0xf0]  ;;  %v3699_v49 = vld [vmem:[#allocation6 + $0x240] sm:$0xf] }
 0x117   :  { %2426 = vmatpush.bf16.msra.mxu0 %v3476_v32  ;;  %v4195_v32 = vld [vmem:[#allocation6 + $0x28c] sm:$0xf0] }
 0x118   :  { %v3732_v34 = vor.u32 %v4195_v32, %v3731_v30  ;;  %v4187_v51 = vld [vmem:[#allocation6 + $0x24c] sm:$0xf0]  ;;  %v4153_v32 = vld [vmem:[#allocation6 + $0x144] sm:$0xf] }
 0x119   :  { %1594 = vmatpush.bf16.msrb.mxu3 %v3376_v60  ;;  %v3604_v60 = vor.u32 %v4163_v55, %v3603_v52  ;;  %v4472_v52 = vld [vmem:[%s4565_s4] sm:$0xf]  ;;  %v4117_v55 = vld [vmem:[#allocation6 + $0x24] sm:$0xf] }
 0x11a   :  { %1583 = vmatpush.bf16.msrb.mxu2 %v3216_v63  ;;  %2438 = vmatpush.bf16.msra.mxu1 %v3620_v48  ;;  %v3640_v48 = vor.u32 %v4169_v45, %v3637_v47  ;;  %v3432_v57 = vor.u32 %v4117_v55, %v3429_v50  ;;  %v749_v56 = vperm.slane %v4472_v52, 0  ;;  %v4197_v45 = vld [vmem:[#allocation6 + $0x2a4] sm:$0xf]  ;;  %v3859_v55 = vld [vmem:[#allocation6 + $0x380] sm:$0xf] }
 0x11b   :  { %v4227_v50 = vld [vmem:[#allocation6 + $0x38c] sm:$0xf0] }
 0x11d   :  { %1595 = vmatpush.bf16.msrb.mxu3 %v3360_v1  ;;  %v3779_v1 = vld [vmem:[#allocation6 + $0x2e0] sm:$0xf] }
 0x11e   :  { %1584 = vmatpush.bf16.msrb.mxu2 %v3200_v59  ;;  %2439 = vmatpush.bf16.msra.mxu1 %v3604_v60  ;;  %v4137_v59 = vld [vmem:[#allocation6 + $0xc4] sm:$0xf]  ;;  %v3780_v5 = vor.u32 %v4207_v3, %v3779_v1  ;;  %v4183_v3 = vld [vmem:[#allocation6 + $0x22c] sm:$0xf0] }
 0x11f   :  { %v4165_v60 = vld [vmem:[#allocation6 + $0x1a4] sm:$0xf] }
 0x121   :  { %1596 = vmatpush.bf16.msrb.mxu3 %v3344_v6  ;;  %v3512_v6 = vor.u32 %v4137_v59, %v3509_v4  ;;  %v4113_v4 = vld [vmem:[#allocation6 + $0x4] sm:$0xf] }
 0x122   :  { %1585 = vmatpush.bf16.msrb.mxu2 %v3184_v8  ;;  %2440 = vmatpush.bf16.msra.mxu1 %v3588_v2  ;;  %v3763_v8 = vld [vmem:[#allocation6 + $0x2c0] sm:$0xf] }
 0x123   :  { %v3764_v14 = vor.u32 %v4203_v11, %v3763_v8  ;;  %v3683_v2 = vld [vmem:[#allocation6 + $0x220] sm:$0xf] }
 0x124   :  { %v3684_v59 = vor.u32 %v4183_v3, %v3683_v2  ;;  %v3667_v11 = vld [vmem:[#allocation6 + $0x200] sm:$0xf]  ;;  %v3733_v3 = vld [vmem:[#allocation6 + $0x290] sm:$0xf0] }
 0x125   :  { %1597 = vmatpush.bf16.msrb.mxu3 %v3328_v12  ;;  %v4133_v12 = vld [vmem:[#allocation6 + $0xa4] sm:$0xf] }
 0x126   :  { %1586 = vmatpush.bf16.msrb.mxu2 %v3168_v16  ;;  %v3496_v16 = vor.u32 %v4133_v12, %v3493_v13  ;;  %2441 = vmatpush.bf16.msra.mxu1 %v3572_v9  ;;  %v4179_v12 = vld [vmem:[#allocation6 + $0x20c] sm:$0xf0]  ;;  %v3907_v13 = vld [vmem:[#allocation6 + $0x3e0] sm:$0xf] }
 0x129   :  { %1598 = vmatpush.bf16.msrb.mxu3 %v3312_v17  ;;  %1587 = vmatmul.bf16.vlgmr.msrb.gmra.mxu2 %v4444_v61  ;;  %v3459_v61 = vld [vmem:[#allocation6 + $0x60] sm:$0xf] }
 0x12a   :  { %2449 = vmatpush.bf16.msra.mxu2 %v3780_v5  ;;  %v3413_v5 = vld [vmem:[#allocation6 + $0x10] sm:$0xf0] }
 0x12b   :  { %v3416_v7 = vor.u32 %v4113_v4, %v3413_v5 }
 0x12d   :  { %1599 = vmatpush.bf16.msrb.mxu3 %v3296_v20  ;;  %v4151_v20 = vld [vmem:[#allocation6 + $0x12c] sm:$0xf0] }
 0x12e   :  { %2450 = vmatpush.bf16.msra.mxu2 %v3764_v14  ;;  %v3556_v22 = vor.u32 %v4151_v20, %v3555_v19  ;;  %v4157_v19 = vld [vmem:[#allocation6 + $0x164] sm:$0xf]  ;;  %v3589_v20 = vld [vmem:[#allocation6 + $0x170] sm:$0xf0] }
 0x130   :  { %1600 = vmatmul.bf16.vlgmr.msrb.gmra.mxu3 %v4449_v23  ;;  %v3460_v23 = vor.u32 %v4127_v33, %v3459_v61  ;;  %2442 = vmatpush.bf16.msra.mxu1 %v3556_v22  ;;  %v4125_v61 = vld [vmem:[#allocation6 + $0x64] sm:$0xf]  ;;  %v3461_v33 = vld [vmem:[#allocation6 + $0x70] sm:$0xf0]  ;;  %v3592_v22 = vor.u32 %v4157_v19, %v3589_v20 }
 0x132   :  { %2427 = vmatpush.bf16.msra.mxu0 %v3460_v23  ;;  %2451 = vmatpush.bf16.msra.mxu2 %v3748_v26  ;;  %v3464_v23 = vor.u32 %v4125_v61, %v3461_v33  ;;  %v3573_v61 = vld [vmem:[#allocation6 + $0x150] sm:$0xf0]  ;;  %v4201_v33 = vld [vmem:[#allocation6 + $0x2c4] sm:$0xf] }
 0x134   :  { %2443 = vmatpush.bf16.msra.mxu1 %v3540_v31 }
 0x136   :  { %2428 = vmatpush.bf16.msra.mxu0 %v3444_v40  ;;  %2452 = vmatpush.bf16.msra.mxu2 %v3732_v34  ;;  %v4191_v40 = vld [vmem:[#allocation6 + $0x26c] sm:$0xf0] }
 0x137   :  { %v3716_v41 = vor.u32 %v4191_v40, %v3715_v39  ;;  %v4231_v39 = vld [vmem:[#allocation6 + $0x3ac] sm:$0xf0] }
 0x138   :  { %2488 = vmatpush.bf16.msrb.mxu1 %v3656_v54  ;;  %v3768_v54 = vor.u32 %v4201_v33, %v3765_v35 }
 0x13a   :  { %2429 = vmatpush.bf16.msra.mxu0 %v3428_v46  ;;  %v3448_v46 = vor.u32 %v4121_v43, %v3445_v44  ;;  %2453 = vmatpush.bf16.msra.mxu2 %v3716_v41  ;;  %v4149_v43 = vld [vmem:[#allocation6 + $0x124] sm:$0xf]  ;;  %v3557_v44 = vld [vmem:[#allocation6 + $0x130] sm:$0xf0] }
 0x13c   :  { %2489 = vmatpush.bf16.msrb.mxu1 %v3640_v48 }
 0x13e   :  { %2430 = vmatpush.bf16.msra.mxu0 %v3412_v53  ;;  %v3700_v53 = vor.u32 %v4187_v51, %v3699_v49  ;;  %v3560_v49 = vor.u32 %v4149_v43, %v3557_v44  ;;  %v4211_v44 = vld [vmem:[#allocation6 + $0x30c] sm:$0xf0] }
 0x140   :  { %2454 = vmatpush.bf16.msra.mxu2 %v3700_v53  ;;  %v750_v53 = vperm.slane %v4472_v52, 1 }
 0x142   :  { %2475 = vmatpush.bf16.msrb.mxu0 %v3528_v58  ;;  %v3621_v58 = vld [vmem:[#allocation6 + $0x1b0] sm:$0xf0] }
 0x143   :  { %v3624_v0 = vor.u32 %v4165_v60, %v3621_v58  ;;  %v3860_v60 = vor.u32 %v4227_v50, %v3859_v55  ;;  %v4145_v58 = vld [vmem:[#allocation6 + $0x104] sm:$0xf]  ;;  %v3909_v55 = vld [vmem:[#allocation6 + $0x3f0] sm:$0xf0] }
 0x144   :  { %2455 = vmatpush.bf16.msra.mxu2 %v3684_v59 }
 0x145   :  { %v4461_v42 = vpop.f32.mrf.mxu0  ;;  %2490 = vmatpush.bf16.msrb.mxu1 %v3624_v0  ;;  %v4193_v0 = vld [vmem:[#allocation6 + $0x284] sm:$0xf] }
 0x146   :  { %2476 = vmatpush.bf16.msrb.mxu0 %v3512_v6  ;;  %v4161_v6 = vld [vmem:[#allocation6 + $0x184] sm:$0xf]  ;;  %v1407_v14 = vadd.f32 %v4461_v42, %v749_v56  ;;  %v4235_v42 = vld [vmem:[#allocation6 + $0x3cc] sm:$0xf0]  ;;  %v3736_v4 = vor.u32 %v4193_v0, %v3733_v3  ;;  %v3499_v0 = vld [vmem:[#allocation6 + $0xa8] sm:$0xf] }
 0x147   :  { %v3608_v9 = vor.u32 %v4161_v6, %v3605_v10  ;;  %v3892_v31 = vor.u32 %v4235_v42, %v3891_v29  ;;  %v3843_v6 = vld [vmem:[#allocation6 + $0x360] sm:$0xf]  ;;  %v3531_v42 = vld [vmem:[#allocation6 + $0xe8] sm:$0xf] }
 0x149   :  { %2491 = vmatpush.bf16.msrb.mxu1 %v3608_v9 }
 0x14a   :  { %2477 = vmatpush.bf16.msrb.mxu0 %v3496_v16  ;;  %v3668_v16 = vor.u32 %v4179_v12, %v3667_v11  ;;  %v4189_v11 = vld [vmem:[#allocation6 + $0x264] sm:$0xf]  ;;  %v3717_v12 = vld [vmem:[#allocation6 + $0x270] sm:$0xf0] }
 0x14c   :  { %2456 = vmatpush.bf16.msra.mxu2 %v3668_v16  ;;  %v3827_v16 = vld [vmem:[#allocation6 + $0x340] sm:$0xf] }
 0x14d   :  { %v4463_v62 = vpop.f32.mrf.mxu1  ;;  %v1408_v63 = vpop.f32.mrf.mxu0  ;;  %2492 = vmatpush.bf16.msrb.mxu1 %v3592_v22  ;;  %v3701_v22 = vld [vmem:[#allocation6 + $0x250] sm:$0xf0] }
 0x14e   :  { %2478 = vmatpush.bf16.msrb.mxu0 %v3480_v27  ;;  %v1420_v25 = vadd.f32 %v4463_v62, %v1407_v14  ;;  %v3784_v27 = vor.u32 %v4205_v15, %v3781_v24 }
 0x150   :  { %2501 = vmatpush.bf16.msrb.mxu2 %v3784_v27  ;;  %v3811_v27 = vld [vmem:[#allocation6 + $0x320] sm:$0xf] }
 0x152   :  { %2479 = vmatpush.bf16.msrb.mxu0 %v3464_v23  ;;  %v3576_v23 = vor.u32 %v4153_v32, %v3573_v61 }
 0x154   :  { %2493 = vmatpush.bf16.msrb.mxu1 %v3576_v23  ;;  %2502 = vmatpush.bf16.msrb.mxu2 %v3768_v54  ;;  %v3685_v23 = vld [vmem:[#allocation6 + $0x230] sm:$0xf0]  ;;  %v751_v54 = vperm.slane %v4472_v52, 2 }
 0x155   :  { %v1421_v17 = vpop.f32.mrf.mxu1  ;;  %v4465_v18 = vpop.f32.mrf.mxu0 }
 0x156   :  { %2480 = vmatpush.bf16.msrb.mxu0 %v3448_v46  ;;  %v4239_v17 = vld [vmem:[#allocation6 + $0x3ec] sm:$0xf0]  ;;  %v3749_v46 = vld [vmem:[#allocation6 + $0x2b0] sm:$0xf0]  ;;  %v1459_v10 = vadd.f32 %v4465_v18, %v750_v53  ;;  %v4237_v53 = vld [vmem:[#allocation6 + $0x3e4] sm:$0xf] }
 0x157   :  { %v3908_v21 = vor.u32 %v4239_v17, %v3907_v13  ;;  %v3752_v51 = vor.u32 %v4197_v45, %v3749_v46  ;;  %v3720_v13 = vor.u32 %v4189_v11, %v3717_v12  ;;  %v4219_v17 = vld [vmem:[#allocation6 + $0x34c] sm:$0xf0]  ;;  %v4177_v45 = vld [vmem:[#allocation6 + $0x204] sm:$0xf]  ;;  %v3669_v46 = vld [vmem:[#allocation6 + $0x210] sm:$0xf0] }
 0x158   :  { %2494 = vmatpush.bf16.msrb.mxu1 %v3560_v49  ;;  %v3828_v20 = vor.u32 %v4219_v17, %v3827_v16  ;;  %v4132_v11 = vld [vmem:[#allocation6 + $0x94] sm:$0xf0]  ;;  %v4229_v12 = vld [vmem:[#allocation6 + $0x3a4] sm:$0xf] }
 0x159   :  { %2462 = vmatpush.bf16.msra.mxu3 %v3908_v21  ;;  %2503 = vmatpush.bf16.msrb.mxu2 %v3752_v51  ;;  %v4185_v21 = vld [vmem:[#allocation6 + $0x244] sm:$0xf]  ;;  %v3672_v51 = vor.u32 %v4177_v45, %v3669_v46 }
 0x15a   :  { %2481 = vmatpush.bf16.msrb.mxu0 %v3432_v57  ;;  %v3704_v18 = vor.u32 %v4185_v21, %v3701_v22 }
 0x15d   :  { %v4467_v37 = vpop.f32.mrf.mxu1  ;;  %v1460_v38 = vpop.f32.mrf.mxu0  ;;  %2463 = vmatpush.bf16.msra.mxu3 %v3892_v31  ;;  %2504 = vmatpush.bf16.msrb.mxu2 %v3736_v4  ;;  %v4181_v31 = vld [vmem:[#allocation6 + $0x224] sm:$0xf] }
 0x15e   :  { %2482 = vmatpush.bf16.msrb.mxu0 %v3416_v7  ;;  %v3875_v38 = vld [vmem:[#allocation6 + $0x3a0] sm:$0xf]  ;;  %v4223_v7 = vld [vmem:[#allocation6 + $0x36c] sm:$0xf0]  ;;  %v1472_v14 = vadd.f32 %v4467_v37, %v1459_v10  ;;  %v4233_v4 = vld [vmem:[#allocation6 + $0x3c4] sm:$0xf] }
 0x15f   :  { %v3876_v41 = vor.u32 %v4231_v39, %v3875_v38  ;;  %v3844_v9 = vor.u32 %v4223_v7, %v3843_v6  ;;  %v3515_v39 = vld [vmem:[#allocation6 + $0xc8] sm:$0xf] }
 0x161   :  { %2464 = vmatpush.bf16.msra.mxu3 %v3876_v41  ;;  %2505 = vmatpush.bf16.msrb.mxu2 %v3720_v13  ;;  %v3877_v13 = vld [vmem:[#allocation6 + $0x3b0] sm:$0xf0] }
 0x162   :  { %v3880_v16 = vor.u32 %v4229_v12, %v3877_v13  ;;  %v3787_v12 = vld [vmem:[#allocation6 + $0x2e8] sm:$0xf] }
 0x165   :  { %v1473_v63 = vpop.f32.mrf.mxu1  ;;  %v4475_v1 = vpop.f32.mrf.mxu0  ;;  %2465 = vmatpush.bf16.msra.mxu3 %v3860_v60  ;;  %2506 = vmatpush.bf16.msrb.mxu2 %v3704_v18  ;;  %v4176_v18 = vld [vmem:[#allocation6 + $0x1f4] sm:$0xf0] }
 0x166   :  { %v3541_v63 = vld [vmem:[#allocation6 + $0x110] sm:$0xf0] }
 0x167   :  { %v3544_v2 = vor.u32 %v4145_v58, %v3541_v63 }
 0x169   :  { %2495 = vmatpush.bf16.msrb.mxu1 %v3544_v2  ;;  %2466 = vmatpush.bf16.msra.mxu3 %v3844_v9  ;;  %v1511_v2 = vadd.f32 %v4475_v1, %v751_v54 }
 0x16b   :  { %v1432_v8 = vpop.f32.mrf.mxu2 }
 0x16c   :  { %v1433_v30 = vadd.f32 %v1432_v8, %v1420_v25 }
 0x16d   :  { %v1512_v28 = vpop.f32.mrf.mxu0  ;;  %2467 = vmatpush.bf16.msra.mxu3 %v3828_v20  ;;  %v3467_v20 = vld [vmem:[#allocation6 + $0x68] sm:$0xf] }
 0x16e   :  { %v4215_v28 = vld [vmem:[#allocation6 + $0x32c] sm:$0xf0] }
 0x170   :  { %v4479_v26 = vpop.f32.mrf.mxu1 }
 0x171   :  { %v1524_v7 = vadd.f32 %v4479_v26, %v1511_v2  ;;  %v3659_v26 = vld [vmem:[#allocation6 + $0x1e8] sm:$0xf]  ;;  %v4164_v2 = vld [vmem:[#allocation6 + $0x194] sm:$0xf0] }
 0x173   :  { %v1445_v34 = vpop.f32.mrf.mxu3  ;;  %v1434_v62 = vpop.f32.mrf.mxu2 }
 0x174   :  { %v4481_v36 = vadd.f32 %v1445_v34, %v1433_v30  ;;  %v3812_v30 = vor.u32 %v4215_v28, %v3811_v27  ;;  %v4144_v34 = vld [vmem:[#allocation6 + $0xf4] sm:$0xf0]  ;;  %v3688_v62 = vor.u32 %v4181_v31, %v3685_v23 }
 0x175   :  { %v3532_v43 = vor.u32 %v4144_v34, %v3531_v42  ;;  %v3451_v34 = vld [vmem:[#allocation6 + $0x48] sm:$0xf]  ;;  %v4124_v23 = vld [vmem:[#allocation6 + $0x54] sm:$0xf0] }
 0x176   :  { %v1609_v40 = vmul.f32 0.044715, %v4481_v36  ;;  %v1605_v61 = vmul.f32 0.5, %v4481_v36  ;;  %2468 = vmatpush.bf16.msra.mxu3 %v3812_v30  ;;  %2507 = vmatpush.bf16.msrb.mxu2 %v3688_v62  ;;  %v3452_v45 = vor.u32 %v4124_v23, %v3451_v34 }
 0x178   :  { %v1613_v47 = vmul.f32 %v1609_v40, %v4481_v36  ;;  %v1525_v48 = vpop.f32.mrf.mxu1  ;;  %v3795_v40 = vld [vmem:[#allocation6 + $0x300] sm:$0xf] }
 0x179   :  { %v4140_v48 = vld [vmem:[#allocation6 + $0xd4] sm:$0xf0]  ;;  %v3796_v49 = vor.u32 %v4211_v44, %v3795_v40 }
 0x17a   :  { %v1617_v57 = vmul.f32 %v1613_v47, %v4481_v36  ;;  %v3516_v63 = vor.u32 %v4140_v48, %v3515_v39  ;;  %2508 = vmatpush.bf16.msrb.mxu2 %v3672_v51  ;;  %v3845_v39 = vld [vmem:[#allocation6 + $0x370] sm:$0xf0]  ;;  %v3627_v48 = vld [vmem:[#allocation6 + $0x1a8] sm:$0xf] }
 0x17b   :  { %v1447_v56 = vpop.f32.mrf.mxu3  ;;  %v1484_v5 = vpop.f32.mrf.mxu2  ;;  %2469 = vmatpush.bf16.msra.mxu3 %v3796_v49  ;;  %v4168_v49 = vld [vmem:[#allocation6 + $0x1b4] sm:$0xf0] }
 0x17c   :  { %v1621_v59 = vadd.f32 %v1617_v57, %v4481_v36  ;;  %v1485_v19 = vadd.f32 %v1484_v5, %v1472_v14  ;;  %v3912_v57 = vor.u32 %v4237_v53, %v3909_v55  ;;  %v3893_v5 = vld [vmem:[#allocation6 + $0x3d0] sm:$0xf0]  ;;  %v4217_v53 = vld [vmem:[#allocation6 + $0x344] sm:$0xf] }
 0x17d   :  { %v3896_v6 = vor.u32 %v4233_v4, %v3893_v5  ;;  %v3829_v55 = vld [vmem:[#allocation6 + $0x350] sm:$0xf0]  ;;  %v4142_v4 = vld [vmem:[#allocation6 + $0xec] sm:$0xf]  ;;  %v3533_v5 = vld [vmem:[#allocation6 + $0xf8] sm:$0xf0] }
 0x17e   :  { %v1625_v8 = vmul.f32 0.7978846, %v1621_v59  ;;  %v4136_v59 = vld [vmem:[#allocation6 + $0xb4] sm:$0xf0] }
 0x17f   :  { %2514 = vmatpush.bf16.msrb.mxu3 %v3912_v57  ;;  %v3500_v10 = vor.u32 %v4136_v59, %v3499_v0  ;;  %v4116_v0 = vld [vmem:[#allocation6 + $0x14] sm:$0xf0]  ;;  %v3813_v59 = vld [vmem:[#allocation6 + $0x330] sm:$0xf0] }
 0x180   :  { %4254 = vtanh.f32 %v1625_v8  ;;  %v3483_v8 = vld [vmem:[#allocation6 + $0x88] sm:$0xf] }
 0x181   :  { %v3484_v22 = vor.u32 %v4132_v11, %v3483_v8  ;;  %v4160_v11 = vld [vmem:[#allocation6 + $0x174] sm:$0xf0] }
 0x183   :  { %v1497_v15 = vpop.f32.mrf.mxu3  ;;  %v1486_v25 = vpop.f32.mrf.mxu2  ;;  %2515 = vmatpush.bf16.msrb.mxu3 %v3896_v6 }
 0x184   :  { %v4490_v24 = vadd.f32 %v1497_v15, %v1485_v19  ;;  %v4128_v15 = vld [vmem:[#allocation6 + $0x74] sm:$0xf0] }
 0x186   :  { %v4255_v29 = vpop.eup %4254  ;;  %v1610_v37 = vmul.f32 0.044715, %v4490_v24  ;;  %v1606_v27 = vmul.f32 0.5, %v4490_v24 }
 0x187   :  { %v4493_v32 = vpop.f32.mrf.mxu0  ;;  %v1633_v33 = vadd.f32 1.0, %v4255_v29  ;;  %2516 = vmatpush.bf16.msrb.mxu3 %v3880_v16  ;;  %v4225_v29 = vld [vmem:[#allocation6 + $0x384] sm:$0xf]  ;;  %v4208_v16 = vld [vmem:[#allocation6 + $0x2f4] sm:$0xf0] }
 0x188   :  { %v1614_v35 = vmul.f32 %v1610_v37, %v4490_v24  ;;  %v3861_v37 = vld [vmem:[#allocation6 + $0x390] sm:$0xf0] }
 0x189   :  { %v1637_v38 = vmul.f32 %v1633_v33, %v1605_v61  ;;  %v3864_v31 = vor.u32 %v4225_v29, %v3861_v37  ;;  %v3468_v61 = vor.u32 %v4128_v15, %v3467_v20  ;;  %v3660_v33 = vor.u32 %v4176_v18, %v3659_v26  ;;  %v3517_v15 = vld [vmem:[#allocation6 + $0xd8] sm:$0xf0]  ;;  %v3579_v37 = vld [vmem:[#allocation6 + $0x148] sm:$0xf] }
 0x18a   :  { %v1618_v41 = vmul.f32 %v1614_v35, %v4490_v24  ;;  %v3643_v35 = vld [vmem:[#allocation6 + $0x1c8] sm:$0xf] }
 0x18b   :  { %v1499_v36 = vpop.f32.mrf.mxu3  ;;  %v4499_v47 = vpack.c.bf16 %v1637_v38, %v1637_v38  ;;  %v1536_v58 = vpop.f32.mrf.mxu2  ;;  %v4172_v38 = vld [vmem:[#allocation6 + $0x1d4] sm:$0xf0]  ;;  %2517 = vmatpush.bf16.msrb.mxu3 %v3864_v31 }
 0x18c   :  { %v1622_v50 = vadd.f32 %v1618_v41, %v4490_v24  ;;  %v1537_v9 = vadd.f32 %v1536_v58, %v1524_v7  ;;  %v4221_v24 = vld [vmem:[#allocation6 + $0x364] sm:$0xf]  ;;  %v3644_v46 = vor.u32 %v4172_v38, %v3643_v35  ;;  %v4120_v36 = vld [vmem:[#allocation6 + $0x34] sm:$0xf0]  ;;  %v3628_v58 = vor.u32 %v4168_v49, %v3627_v48  ;;  %v3563_v38 = vld [vmem:[#allocation6 + $0x128] sm:$0xf] }
 0x18d   :  { %2431 = vmatmul.bf16.vlgmr.msra.gmra.mxu0 %v4499_v47  ;;  %v3848_v41 = vor.u32 %v4221_v24, %v3845_v39  ;;  %v752_v7 = vperm.slane %v4472_v52, 3  ;;  %v4152_v24 = vld [vmem:[#allocation6 + $0x134] sm:$0xf0]  ;;  %v3755_v39 = vld [vmem:[#allocation6 + $0x2a8] sm:$0xf] }
 0x18e   :  { %v4502_v60 = vpop.f32.mrf.mxu1  ;;  %2527 = vmatpush.bf16.msra.mxu0 %v3532_v43  ;;  %v1626_v56 = vmul.f32 0.7978846, %v1622_v50  ;;  %v3435_v43 = vld [vmem:[#allocation6 + $0x28] sm:$0xf]  ;;  %v3832_v50 = vor.u32 %v4217_v53, %v3829_v55  ;;  %v4148_v53 = vld [vmem:[#allocation6 + $0x114] sm:$0xf0] }
 0x18f   :  { %v1564_v3 = vpop.f32.mrf.mxu0  ;;  %2518 = vmatpush.bf16.msrb.mxu3 %v3848_v41  ;;  %v3436_v57 = vor.u32 %v4120_v36, %v3435_v43  ;;  %v4200_v41 = vld [vmem:[#allocation6 + $0x2b4] sm:$0xf0]  ;;  %v4130_v43 = vld [vmem:[#allocation6 + $0x8c] sm:$0xf]  ;;  %v3547_v36 = vld [vmem:[#allocation6 + $0x108] sm:$0xf] }
 0x190   :  { %4256 = vtanh.f32 %v1626_v56  ;;  %v3611_v56 = vld [vmem:[#allocation6 + $0x188] sm:$0xf]  ;;  %v4213_v3 = vld [vmem:[#allocation6 + $0x324] sm:$0xf]  ;;  %v3756_v49 = vor.u32 %v4200_v41, %v3755_v39  ;;  %v4240_v39 = vld [vmem:[#allocation6 + $0x3f4] sm:$0xf0] }
 0x191   :  { %v3816_v6 = vor.u32 %v4213_v3, %v3813_v59  ;;  %v3612_v8 = vor.u32 %v4164_v2, %v3611_v56  ;;  %v3739_v55 = vld [vmem:[#allocation6 + $0x288] sm:$0xf]  ;;  %v3661_v56 = vld [vmem:[#allocation6 + $0x1f8] sm:$0xf0]  ;;  %v3548_v2 = vor.u32 %v4148_v53, %v3547_v36 }
 0x192   :  { %2528 = vmatpush.bf16.msra.mxu0 %v3516_v63  ;;  %v3419_v63 = vld [vmem:[#allocation6 + $0x8] sm:$0xf]  ;;  %v3597_v41 = vld [vmem:[#allocation6 + $0x178] sm:$0xf0] }
 0x193   :  { %v1549_v14 = vpop.f32.mrf.mxu3  ;;  %v1538_v19 = vpop.f32.mrf.mxu2  ;;  %2519 = vmatpush.bf16.msrb.mxu3 %v3832_v50  ;;  %v4196_v50 = vld [vmem:[#allocation6 + $0x294] sm:$0xf0]  ;;  %v3899_v53 = vld [vmem:[#allocation6 + $0x3c8] sm:$0xf] }
 0x194   :  { %v4507_v1 = vadd.f32 %v1549_v14, %v1537_v9  ;;  %v3595_v9 = vld [vmem:[#allocation6 + $0x168] sm:$0xf]  ;;  %v3536_v14 = vor.u32 %v4142_v4, %v3533_v5  ;;  %v3797_v19 = vld [vmem:[#allocation6 + $0x310] sm:$0xf0]  ;;  %v3740_v59 = vor.u32 %v4196_v50, %v3739_v55  ;;  %v4236_v55 = vld [vmem:[#allocation6 + $0x3d4] sm:$0xf0] }
 0x195   :  { %v3723_v5 = vld [vmem:[#allocation6 + $0x268] sm:$0xf]  ;;  %v4154_v50 = vld [vmem:[#allocation6 + $0x14c] sm:$0xf] }
 0x196   :  { %v1577_v17 = vpop.f32.mrf.mxu1  ;;  %v4257_v21 = vpop.eup %4256  ;;  %2529 = vmatpush.bf16.msra.mxu0 %v3500_v10  ;;  %v1611_v25 = vmul.f32 0.044715, %v4507_v1  ;;  %v3420_v10 = vor.u32 %v4116_v0, %v3419_v63  ;;  %v1607_v20 = vmul.f32 0.5, %v4507_v1  ;;  %v4174_v0 = vld [vmem:[#allocation6 + $0x1ec] sm:$0xf] }
 0x197   :  { %v1634_v28 = vadd.f32 1.0, %v4257_v21  ;;  %2520 = vmatpush.bf16.msrb.mxu3 %v3816_v6  ;;  %v4209_v17 = vld [vmem:[#allocation6 + $0x304] sm:$0xf] }
 0x198   :  { %v1615_v42 = vmul.f32 %v1611_v25, %v4507_v1  ;;  %v3800_v26 = vor.u32 %v4209_v17, %v3797_v19  ;;  %v3596_v25 = vor.u32 %v4160_v11, %v3595_v9  ;;  %v3453_v9 = vld [vmem:[#allocation6 + $0x58] sm:$0xf0]  ;;  %v4170_v11 = vld [vmem:[#allocation6 + $0x1cc] sm:$0xf]  ;;  %v3707_v17 = vld [vmem:[#allocation6 + $0x248] sm:$0xf] }
 0x199   :  { %v1638_v30 = vmul.f32 %v1634_v28, %v1606_v27  ;;  %v1563_v27 = vadd.f32 %v4493_v32, %v752_v7  ;;  %v3788_v28 = vor.u32 %v4208_v16, %v3787_v12  ;;  %v3664_v7 = vor.u32 %v4174_v0, %v3661_v56  ;;  %v3645_v12 = vld [vmem:[#allocation6 + $0x1d8] sm:$0xf0] }
 0x19a   :  { %2530 = vmatpush.bf16.msra.mxu0 %v3484_v22  ;;  %v1619_v62 = vmul.f32 %v1615_v42, %v4507_v1  ;;  %v4138_v22 = vld [vmem:[#allocation6 + $0xcc] sm:$0xf]  ;;  %v4156_v42 = vld [vmem:[#allocation6 + $0x154] sm:$0xf0] }
 0x19b   :  { %v4513_v54 = vpack.c.bf16 %v1638_v30, %v1638_v30  ;;  %v1551_v40 = vpop.f32.mrf.mxu3  ;;  %v3520_v29 = vor.u32 %v4138_v22, %v3517_v15  ;;  %v3771_v30 = vld [vmem:[#allocation6 + $0x2c8] sm:$0xf]  ;;  %2521 = vmatpush.bf16.msrb.mxu3 %v3800_v26  ;;  %v1576_v34 = vadd.f32 %v4502_v60, %v1563_v27  ;;  %v3580_v32 = vor.u32 %v4156_v42, %v3579_v37  ;;  %v3485_v60 = vld [vmem:[#allocation6 + $0x98] sm:$0xf0]  ;;  %v4118_v22 = vld [vmem:[#allocation6 + $0x2c] sm:$0xf] }
 0x19c   :  { %v1623_v44 = vadd.f32 %v1619_v62, %v4507_v1  ;;  %v4204_v1 = vld [vmem:[#allocation6 + $0x2d4] sm:$0xf0]  ;;  %v3437_v15 = vld [vmem:[#allocation6 + $0x38] sm:$0xf0]  ;;  %v4166_v26 = vld [vmem:[#allocation6 + $0x1ac] sm:$0xf] }
 0x19d   :  { %2444 = vmatmul.bf16.vlgmr.msra.gmra.mxu1 %v4513_v54  ;;  %2483 = vmatmul.bf16.vlgmr.msrb.gmra.mxu0 %v4499_v47  ;;  %v3772_v35 = vor.u32 %v4204_v1, %v3771_v30  ;;  %v3691_v27 = vld [vmem:[#allocation6 + $0x228] sm:$0xf]  ;;  %v4114_v37 = vld [vmem:[#allocation6 + $0xc] sm:$0xf]  ;;  %v3421_v42 = vld [vmem:[#allocation6 + $0x18] sm:$0xf0] }
 0x19e   :  { %2531 = vmatpush.bf16.msra.mxu0 %v3468_v61  ;;  %2540 = vmatpush.bf16.msra.mxu1 %v3660_v33  ;;  %v1627_v51 = vmul.f32 0.7978846, %v1623_v44  ;;  %v4134_v61 = vld [vmem:[#allocation6 + $0xac] sm:$0xf]  ;;  %v3501_v33 = vld [vmem:[#allocation6 + $0xb8] sm:$0xf0] }
 0x19f   :  { %v3504_v62 = vor.u32 %v4134_v61, %v3501_v33  ;;  %v4162_v30 = vld [vmem:[#allocation6 + $0x18c] sm:$0xf]  ;;  %v3613_v1 = vld [vmem:[#allocation6 + $0x198] sm:$0xf0] }
 0x1a0   :  { %4258 = vtanh.f32 %v1627_v51  ;;  %v3488_v51 = vor.u32 %v4130_v43, %v3485_v60  ;;  %v4206_v43 = vld [vmem:[#allocation6 + $0x2ec] sm:$0xf]  ;;  %v3789_v60 = vld [vmem:[#allocation6 + $0x2f8] sm:$0xf0] }
 0x1a2   :  { %2532 = vmatpush.bf16.msra.mxu0 %v3452_v45  ;;  %2541 = vmatpush.bf16.msra.mxu1 %v3644_v46  ;;  %v3564_v46 = vor.u32 %v4152_v24, %v3563_v38 }
 0x1a6   :  { %2533 = vmatpush.bf16.msra.mxu0 %v3436_v57  ;;  %2542 = vmatpush.bf16.msra.mxu1 %v3628_v58  ;;  %v4259_v13 = vpop.eup %4258  ;;  %v4126_v57 = vld [vmem:[#allocation6 + $0x6c] sm:$0xf]  ;;  %v3469_v58 = vld [vmem:[#allocation6 + $0x78] sm:$0xf0] }
 0x1a7   :  { %v1635_v21 = vadd.f32 1.0, %v4259_v13  ;;  %v3472_v4 = vor.u32 %v4126_v57, %v3469_v58  ;;  %v4202_v57 = vld [vmem:[#allocation6 + $0x2cc] sm:$0xf]  ;;  %v3773_v58 = vld [vmem:[#allocation6 + $0x2d8] sm:$0xf0] }
 0x1a8   :  { %v3776_v56 = vor.u32 %v4202_v57, %v3773_v58  ;;  %v4218_v57 = vld [vmem:[#allocation6 + $0x34c] sm:$0xf]  ;;  %v3837_v58 = vld [vmem:[#allocation6 + $0x358] sm:$0xf0] }
 0x1a9   :  { %v1639_v18 = vmul.f32 %v1635_v21, %v1607_v20  ;;  %v3648_v20 = vor.u32 %v4170_v11, %v3645_v12  ;;  %v4188_v21 = vld [vmem:[#allocation6 + $0x254] sm:$0xf0]  ;;  %v4146_v11 = vld [vmem:[#allocation6 + $0x10c] sm:$0xf]  ;;  %v3549_v12 = vld [vmem:[#allocation6 + $0x118] sm:$0xf0] }
 0x1aa   :  { %2534 = vmatpush.bf16.msra.mxu0 %v3420_v10  ;;  %2543 = vmatpush.bf16.msra.mxu1 %v3612_v8  ;;  %v4192_v10 = vld [vmem:[#allocation6 + $0x274] sm:$0xf0]  ;;  %v4122_v8 = vld [vmem:[#allocation6 + $0x4c] sm:$0xf] }
 0x1ab   :  { %v4521_v31 = vpack.c.bf16 %v1639_v18, %v1639_v18  ;;  %v3456_v16 = vor.u32 %v4122_v8, %v3453_v9  ;;  %v3708_v18 = vor.u32 %v4188_v21, %v3707_v17  ;;  %v3867_v8 = vld [vmem:[#allocation6 + $0x388] sm:$0xf]  ;;  %v4228_v9 = vld [vmem:[#allocation6 + $0x394] sm:$0xf0]  ;;  %v3552_v17 = vor.u32 %v4146_v11, %v3549_v12 }
 0x1ac   :  { %v1588_v52 = vpop.f32.mrf.mxu2  ;;  %v4224_v21 = vld [vmem:[#allocation6 + $0x374] sm:$0xf0] }
 0x1ad   :  { %2496 = vmatmul.bf16.vlgmr.msrb.gmra.mxu1 %v4513_v54  ;;  %2535 = vmatmul.bf16.vlgmr.msra.gmra.mxu0 %v4499_v47  ;;  %v1589_v23 = vadd.f32 %v1588_v52, %v1576_v34  ;;  %v3629_v52 = vld [vmem:[#allocation6 + $0x1b8] sm:$0xf0]  ;;  %v3424_v34 = vor.u32 %v4114_v37, %v3421_v42  ;;  %v3819_v42 = vld [vmem:[#allocation6 + $0x328] sm:$0xf] }
 0x1ae   :  { %2579 = vmatpush.bf16.msrb.mxu0 %v3536_v14  ;;  %2457 = vmatmul.bf16.vlgmr.msra.gmra.mxu2 %v4521_v31  ;;  %v3724_v14 = vor.u32 %v4192_v10, %v3723_v5  ;;  %v4198_v5 = vld [vmem:[#allocation6 + $0x2ac] sm:$0xf] }
 0x1af   :  { %2544 = vmatpush.bf16.msra.mxu1 %v3596_v25  ;;  %2553 = vmatpush.bf16.msra.mxu2 %v3788_v28  ;;  %v3440_v25 = vor.u32 %v4118_v22, %v3437_v15  ;;  %v3632_v28 = vor.u32 %v4166_v26, %v3629_v52  ;;  %v4190_v22 = vld [vmem:[#allocation6 + $0x26c] sm:$0xf]  ;;  %v3725_v15 = vld [vmem:[#allocation6 + $0x278] sm:$0xf0] }
 0x1b0   :  { %v3728_v52 = vor.u32 %v4190_v22, %v3725_v15 }
 0x1b2   :  { %2580 = vmatpush.bf16.msrb.mxu0 %v3520_v29  ;;  %v4184_v29 = vld [vmem:[#allocation6 + $0x234] sm:$0xf0] }
 0x1b3   :  { %v1601_v40 = vpop.f32.mrf.mxu3  ;;  %2545 = vmatpush.bf16.msra.mxu1 %v3580_v32  ;;  %2554 = vmatpush.bf16.msra.mxu2 %v3772_v35  ;;  %v3692_v33 = vor.u32 %v4184_v29, %v3691_v27  ;;  %v3675_v32 = vld [vmem:[#allocation6 + $0x208] sm:$0xf]  ;;  %v4186_v27 = vld [vmem:[#allocation6 + $0x24c] sm:$0xf] }
 0x1b4   :  { %v4527_v44 = vadd.f32 %v1601_v40, %v1589_v23  ;;  %v1590_v45 = vpop.f32.mrf.mxu2  ;;  %v4180_v23 = vld [vmem:[#allocation6 + $0x214] sm:$0xf0]  ;;  %v3915_v35 = vld [vmem:[#allocation6 + $0x3e8] sm:$0xf]  ;;  %v4158_v40 = vld [vmem:[#allocation6 + $0x16c] sm:$0xf] }
 0x1b5   :  { %v3916_v36 = vor.u32 %v4240_v39, %v3915_v35  ;;  %v4178_v35 = vld [vmem:[#allocation6 + $0x20c] sm:$0xf] }
 0x1b6   :  { %v1612_v48 = vmul.f32 0.044715, %v4527_v44  ;;  %2581 = vmatpush.bf16.msrb.mxu0 %v3504_v62  ;;  %v3616_v62 = vor.u32 %v4162_v30, %v3613_v1  ;;  %v1608_v38 = vmul.f32 0.5, %v4527_v44  ;;  %v4216_v30 = vld [vmem:[#allocation6 + $0x334] sm:$0xf0] }
 0x1b7   :  { %2546 = vmatpush.bf16.msra.mxu1 %v3564_v46  ;;  %2555 = vmatpush.bf16.msra.mxu2 %v3756_v49  ;;  %v3676_v46 = vor.u32 %v4180_v23, %v3675_v32  ;;  %v3600_v49 = vor.u32 %v4158_v40, %v3597_v41  ;;  %v4182_v1 = vld [vmem:[#allocation6 + $0x22c] sm:$0xf]  ;;  %v3803_v32 = vld [vmem:[#allocation6 + $0x308] sm:$0xf]  ;;  %v4212_v23 = vld [vmem:[#allocation6 + $0x314] sm:$0xf0] }
 0x1b8   :  { %v1616_v63 = vmul.f32 %v1612_v48, %v4527_v44  ;;  %v3804_v39 = vor.u32 %v4212_v23, %v3803_v32  ;;  %v4234_v41 = vld [vmem:[#allocation6 + $0x3cc] sm:$0xf] }
 0x1ba   :  { %v1620_v3 = vmul.f32 %v1616_v63, %v4527_v44  ;;  %2582 = vmatpush.bf16.msrb.mxu0 %v3488_v51  ;;  %v3792_v51 = vor.u32 %v4206_v43, %v3789_v60  ;;  %v3900_v63 = vor.u32 %v4236_v55, %v3899_v53  ;;  %v3901_v43 = vld [vmem:[#allocation6 + $0x3d8] sm:$0xf0]  ;;  %v4222_v55 = vld [vmem:[#allocation6 + $0x36c] sm:$0xf] }
 0x1bb   :  { %v1603_v6 = vpop.f32.mrf.mxu3  ;;  %2547 = vmatpush.bf16.msra.mxu1 %v3548_v2  ;;  %2556 = vmatpush.bf16.msra.mxu2 %v3740_v59  ;;  %v3883_v2 = vld [vmem:[#allocation6 + $0x3a8] sm:$0xf]  ;;  %v4150_v59 = vld [vmem:[#allocation6 + $0x12c] sm:$0xf]  ;;  %v3904_v60 = vor.u32 %v4234_v41, %v3901_v43 }
 0x1bc   :  { %v1624_v13 = vadd.f32 %v1620_v3, %v4527_v44  ;;  %v3581_v44 = vld [vmem:[#allocation6 + $0x158] sm:$0xf0]  ;;  %v4232_v3 = vld [vmem:[#allocation6 + $0x3b4] sm:$0xf0] }
 0x1bd   :  { %v3584_v0 = vor.u32 %v4154_v50, %v3581_v44  ;;  %v3757_v6 = vld [vmem:[#allocation6 + $0x2b8] sm:$0xf0] }
 0x1be   :  { %2583 = vmatpush.bf16.msrb.mxu0 %v3472_v4  ;;  %v1628_v19 = vmul.f32 0.7978846, %v1624_v13  ;;  %2548 = vmatmul.bf16.vlgmr.msra.gmra.mxu1 %v4513_v54  ;;  %v3565_v4 = vld [vmem:[#allocation6 + $0x138] sm:$0xf0]  ;;  %v3760_v10 = vor.u32 %v4198_v5, %v3757_v6  ;;  %v4194_v13 = vld [vmem:[#allocation6 + $0x28c] sm:$0xf] }
 0x1bf   :  { %2592 = vmatpush.bf16.msrb.mxu1 %v3664_v7  ;;  %2509 = vmatmul.bf16.vlgmr.msrb.gmra.mxu2 %v4521_v31  ;;  %v3884_v7 = vor.u32 %v4232_v3, %v3883_v2  ;;  %v3853_v50 = vld [vmem:[#allocation6 + $0x378] sm:$0xf0]  ;;  %v4210_v3 = vld [vmem:[#allocation6 + $0x30c] sm:$0xf] }
 0x1c0   :  { %4260 = vtanh.f32 %v1628_v19  ;;  %2557 = vmatpush.bf16.msra.mxu2 %v3724_v14  ;;  %v3741_v14 = vld [vmem:[#allocation6 + $0x298] sm:$0xf0]  ;;  %v3856_v44 = vor.u32 %v4222_v55, %v3853_v50 }
 0x1c1   :  { %v3744_v19 = vor.u32 %v4194_v13, %v3741_v14 }
 0x1c2   :  { %2584 = vmatpush.bf16.msrb.mxu0 %v3456_v16  ;;  %v3868_v16 = vor.u32 %v4228_v9, %v3867_v8 }
 0x1c3   :  { %2593 = vmatpush.bf16.msrb.mxu1 %v3648_v20  ;;  %v3851_v20 = vld [vmem:[#allocation6 + $0x368] sm:$0xf] }
 0x1c4   :  { %2558 = vmatpush.bf16.msra.mxu2 %v3708_v18  ;;  %v3852_v26 = vor.u32 %v4224_v21, %v3851_v20  ;;  %v3835_v18 = vld [vmem:[#allocation6 + $0x348] sm:$0xf] }
 0x1c6   :  { %v4261_v61 = vpop.eup %4260  ;;  %2585 = vmatpush.bf16.msrb.mxu0 %v3440_v25  ;;  %v4220_v25 = vld [vmem:[#allocation6 + $0x354] sm:$0xf0] }
 0x1c7   :  { %2594 = vmatpush.bf16.msrb.mxu1 %v3632_v28  ;;  %v1636_v24 = vadd.f32 1.0, %v4261_v61  ;;  %v3709_v28 = vld [vmem:[#allocation6 + $0x258] sm:$0xf0]  ;;  %v3836_v29 = vor.u32 %v4220_v25, %v3835_v18 }
 0x1c8   :  { %2559 = vmatpush.bf16.msra.mxu2 %v3692_v33  ;;  %v3712_v37 = vor.u32 %v4186_v27, %v3709_v28  ;;  %v3693_v61 = vld [vmem:[#allocation6 + $0x238] sm:$0xf0]  ;;  %v3820_v33 = vor.u32 %v4216_v30, %v3819_v42 }
 0x1c9   :  { %v1640_v45 = vmul.f32 %v1636_v24, %v1608_v38  ;;  %v4238_v38 = vld [vmem:[#allocation6 + $0x3ec] sm:$0xf]  ;;  %v3917_v24 = vld [vmem:[#allocation6 + $0x3f8] sm:$0xf0] }
 0x1ca   :  { %2586 = vmatpush.bf16.msrb.mxu0 %v3424_v34  ;;  %v3696_v34 = vor.u32 %v4182_v1, %v3693_v61  ;;  %v3920_v40 = vor.u32 %v4238_v38, %v3917_v24 }
 0x1cb   :  { %2595 = vmatpush.bf16.msrb.mxu1 %v3616_v62  ;;  %v4536_v48 = vpack.c.bf16 %v1640_v45, %v1640_v45  ;;  %v3677_v62 = vld [vmem:[#allocation6 + $0x218] sm:$0xf0]  ;;  %v4230_v45 = vld [vmem:[#allocation6 + $0x3ac] sm:$0xf] }
 0x1cc   :  { %2560 = vmatpush.bf16.msra.mxu2 %v3676_v46  ;;  %v3885_v46 = vld [vmem:[#allocation6 + $0x3b8] sm:$0xf0] }
 0x1cd   :  { %2470 = vmatmul.bf16.vlgmr.msra.gmra.mxu3 %v4536_v48  ;;  %2587 = vmatmul.bf16.vlgmr.msrb.gmra.mxu0 %v4499_v47  ;;  %v3568_v47 = vor.u32 %v4150_v59, %v3565_v4 }
 0x1ce   :  { %2566 = vmatpush.bf16.msra.mxu3 %v3916_v36  ;;  %v3888_v36 = vor.u32 %v4230_v45, %v3885_v46 }
 0x1cf   :  { %2596 = vmatpush.bf16.msrb.mxu1 %v3600_v49  ;;  %2561 = vmatmul.bf16.vlgmr.msra.gmra.mxu2 %v4521_v31  ;;  %v4226_v49 = vld [vmem:[#allocation6 + $0x38c] sm:$0xf] }
 0x1d0   :  { %2605 = vmatpush.bf16.msrb.mxu2 %v3792_v51  ;;  %v3869_v51 = vld [vmem:[#allocation6 + $0x398] sm:$0xf0] }
 0x1d1   :  { %v3872_v53 = vor.u32 %v4226_v49, %v3869_v51 }
 0x1d2   :  { %2567 = vmatpush.bf16.msra.mxu3 %v3900_v63  ;;  %v3840_v63 = vor.u32 %v4218_v57, %v3837_v58 }
 0x1d3   :  { %2597 = vmatpush.bf16.msrb.mxu1 %v3584_v0  ;;  %v4214_v0 = vld [vmem:[#allocation6 + $0x32c] sm:$0xf] }
 0x1d4   :  { %2606 = vmatpush.bf16.msrb.mxu2 %v3776_v56  ;;  %v3821_v56 = vld [vmem:[#allocation6 + $0x338] sm:$0xf0] }
 0x1d5   :  { %v3824_v2 = vor.u32 %v4214_v0, %v3821_v56 }
 0x1d6   :  { %2568 = vmatpush.bf16.msra.mxu3 %v3884_v7 }
 0x1d7   :  { %2598 = vmatpush.bf16.msrb.mxu1 %v3568_v47 }
 0x1d8   :  { %2607 = vmatpush.bf16.msrb.mxu2 %v3760_v10 }
 0x1da   :  { %2569 = vmatpush.bf16.msra.mxu3 %v3868_v16 }
 0x1db   :  { %2599 = vmatpush.bf16.msrb.mxu1 %v3552_v17  ;;  %v1773_v17 = vld [vmem:[%s4567_s6] sm:$0xf] }
 0x1dc   :  { %2608 = vmatpush.bf16.msrb.mxu2 %v3744_v19  ;;  %v1778_v45 = vperm.slane %v1773_v17, 3 }
 0x1dd   :  { %2522 = vmatmul.bf16.vlgmr.msrb.gmra.mxu3 %v4536_v48 }
 0x1de   :  { %2570 = vmatpush.bf16.msra.mxu3 %v3852_v26  ;;  %2600 = vmatmul.bf16.vlgmr.msrb.gmra.mxu1 %v4513_v54  ;;  %v3680_v54 = vor.u32 %v4178_v35, %v3677_v62  ;;  %v1777_v35 = vperm.slane %v1773_v17, 2 }
 0x1e0   :  { %2609 = vmatpush.bf16.msrb.mxu2 %v3728_v52 }
 0x1e2   :  { %2571 = vmatpush.bf16.msra.mxu3 %v3836_v29  ;;  %v1776_v29 = vperm.slane %v1773_v17, 1 }
 0x1e4   :  { %2610 = vmatpush.bf16.msrb.mxu2 %v3712_v37 }
 0x1e6   :  { %2572 = vmatpush.bf16.msra.mxu3 %v3820_v33 }
 0x1e8   :  { %2611 = vmatpush.bf16.msrb.mxu2 %v3696_v34 }
 0x1ea   :  { %2573 = vmatpush.bf16.msra.mxu3 %v3804_v39 }
 0x1ec   :  { %2612 = vmatpush.bf16.msrb.mxu2 %v3680_v54 }
 0x1ed   :  { %2574 = vmatmul.bf16.vlgmr.msra.gmra.mxu3 %v4536_v48 }
 0x1ee   :  { %2618 = vmatpush.bf16.msrb.mxu3 %v3920_v40 }
 0x1ef   :  { %2613 = vmatmul.bf16.vlgmr.msrb.gmra.mxu2 %v4521_v31  ;;  %v3805_v31 = vld [vmem:[#allocation6 + $0x318] sm:$0xf0] }
 0x1f0   :  { %v3808_v59 = vor.u32 %v4210_v3, %v3805_v31 }
 0x1f2   :  { %2619 = vmatpush.bf16.msrb.mxu3 %v3904_v60 }
 0x1f6   :  { %2620 = vmatpush.bf16.msrb.mxu3 %v3888_v36 }
 0x1fa   :  { %2621 = vmatpush.bf16.msrb.mxu3 %v3872_v53 }
 0x1fe   :  { %2622 = vmatpush.bf16.msrb.mxu3 %v3856_v44 }
 0x202   :  { %2623 = vmatpush.bf16.msrb.mxu3 %v3840_v63 }
 0x206   :  { %2624 = vmatpush.bf16.msrb.mxu3 %v3824_v2 }
 0x20a   :  { %2625 = vmatpush.bf16.msrb.mxu3 %v3808_v59  ;;  %v2432_v4 = vpop.f32.mrf.mxu0 }
 0x20d   :  { %2626 = vmatmul.bf16.vlgmr.msrb.gmra.mxu3 %v4536_v48  ;;  %v1775_v48 = vperm.slane %v1773_v17, 0 }
 0x20f   :  { %v2433_v22 = vadd.f32 %v2432_v4, %v1775_v48 }
 0x212   :  { %v2434_v5 = vpop.f32.mrf.mxu0 }
 0x21a   :  { %v2445_v6 = vpop.f32.mrf.mxu1  ;;  %v2484_v7 = vpop.f32.mrf.mxu0 }
 0x21b   :  { %v2446_v26 = vadd.f32 %v2445_v6, %v2433_v22  ;;  %v2485_v42 = vadd.f32 %v2484_v7, %v1776_v29 }
 0x222   :  { %v2447_v47 = vpop.f32.mrf.mxu1  ;;  %v2486_v10 = vpop.f32.mrf.mxu0 }
 0x22a   :  { %v2497_v8 = vpop.f32.mrf.mxu1  ;;  %v2536_v9 = vpop.f32.mrf.mxu0 }
 0x22b   :  { %v2498_v61 = vadd.f32 %v2497_v8, %v2485_v42  ;;  %v2537_v38 = vadd.f32 %v2536_v9, %v1777_v35 }
 0x231   :  { %v2458_v11 = vpop.f32.mrf.mxu2 }
 0x232   :  { %v2499_v12 = vpop.f32.mrf.mxu1  ;;  %v2538_v13 = vpop.f32.mrf.mxu0  ;;  %v2459_v52 = vadd.f32 %v2458_v11, %v2446_v26 }
 0x239   :  { %v2460_v14 = vpop.f32.mrf.mxu2 }
 0x23b   :  { %v2549_v16 = vpop.f32.mrf.mxu1 }
 0x23c   :  { %v2550_v24 = vadd.f32 %v2549_v16, %v2537_v38 }
 0x242   :  { %v2510_v19 = vpop.f32.mrf.mxu2 }
 0x243   :  { %v2551_v20 = vpop.f32.mrf.mxu1  ;;  %v2511_v33 = vadd.f32 %v2510_v19, %v2498_v61 }
 0x24a   :  { %v2588_v21 = vpop.f32.mrf.mxu0  ;;  %v2512_v15 = vpop.f32.mrf.mxu2 }
 0x24b   :  { %v2589_v46 = vadd.f32 %v2588_v21, %v1778_v45 }
 0x250   :  { %v2471_v18 = vpop.f32.mrf.mxu3 }
 0x251   :  { %v2472_v25 = vadd.f32 %v2471_v18, %v2459_v52 }
 0x252   :  { %v2590_v27 = vpop.f32.mrf.mxu0  ;;  %v2562_v28 = vpop.f32.mrf.mxu2 }
 0x253   :  { %2631 = vst [vmem:[%s4568_s7] sm:$0xff] %v2472_v25  ;;  %v2563_v39 = vadd.f32 %v2562_v28, %v2550_v24 }
 0x258   :  { %v2473_v37 = vpop.f32.mrf.mxu3 }
 0x25a   :  { %v2564_v1 = vpop.f32.mrf.mxu2 }
 0x25b   :  { %v2601_v30 = vpop.f32.mrf.mxu1 }
 0x25c   :  { %v2602_v36 = vadd.f32 %v2601_v30, %v2589_v46 }
 0x260   :  { %v2523_v34 = vpop.f32.mrf.mxu3 }
 0x261   :  { %v2524_v32 = vadd.f32 %v2523_v34, %v2511_v33 }
 0x263   :  { %2632 = vst [vmem:[%s4568_s7 + $0x8] sm:$0xff] %v2524_v32  ;;  %v2603_v23 = vpop.f32.mrf.mxu1 }
 0x268   :  { %v2525_v62 = vpop.f32.mrf.mxu3 }
 0x270   :  { %v2575_v54 = vpop.f32.mrf.mxu3 }
 0x271   :  { %v2576_v40 = vadd.f32 %v2575_v54, %v2563_v39 }
 0x272   :  { %v2614_v41 = vpop.f32.mrf.mxu2 }
 0x273   :  { %2633 = vst [vmem:[%s4568_s7 + $0x10] sm:$0xff] %v2576_v40  ;;  %v2615_v49 = vadd.f32 %v2614_v41, %v2602_v36 }
 0x278   :  { %v2577_v43 = vpop.f32.mrf.mxu3 }
 0x27a   :  { %v2616_v60 = vpop.f32.mrf.mxu2 }
 0x290   :  { %v2627_v51 = vpop.f32.mrf.mxu3 }
 0x291   :  { %v2628_v53 = vadd.f32 %v2627_v51, %v2615_v49 }
 0x293   :  { %2634 = vst [vmem:[%s4568_s7 + $0x18] sm:$0xff] %v2628_v53 }
 0x298   :  { %v2629_v55 = vpop.f32.mrf.mxu3 }
 0x299   :  { %2639 = vsyncpa [#allocation3], 1 }
 0x29a   :  { %2640 = vsyncpa [#allocation5], 1 }

</bundles_post_ra>
